<compile_context>
chip_gen: v7x
topology: tpu7x:2x2x1
jax: 0.10.0
libtpu: 0.0.40
codegen_flags: <defaults>
</compile_context>

<pallas_src>
import functools

import jax
import jax.numpy as jnp
from jax import lax
from jax.experimental import pallas as pl
from jax.experimental.pallas import tpu as pltpu


# ----------------------------------------------------------------------------
# Fused kernel
# ----------------------------------------------------------------------------
def _layernorm(x, gamma, beta, eps=1e-5):
    mu = jnp.mean(x, axis=-1, keepdims=True)
    var = jnp.mean((x - mu) ** 2, axis=-1, keepdims=True)
    return (x - mu) * lax.rsqrt(var + eps) * gamma + beta


def _cross_attn_kernel(x_ref, src_ref, wq_ref, wk_ref, wv_ref, wm_ref,
                       g1_ref, b1_ref, w1x_ref, w1m_ref, w2_ref,
                       g2_ref, b2_ref, o_ref, *, nhead, scale):
    f32, bf16 = jnp.float32, jnp.bfloat16
    B, L, C = x_ref.shape          # block: (batch_block, L, C)
    S = src_ref.shape[1]

    x2d = x_ref[...].reshape(B * L, C)                       # [B*L, C]
    x_bf = x2d.astype(bf16)
    s_bf = src_ref[...].reshape(B * S, C).astype(bf16)       # [B*S, C]

    # ---- per-head q/k/v projections (bf16 operands, f32 accumulation).
    # Weights are pre-split per head -> no lane-unaligned column slicing.
    q_h = [jnp.dot(x_bf, wq_ref[h], preferred_element_type=f32) * scale
           for h in range(nhead)]                            # nhead x [B*L, D]
    k_h = [jnp.dot(s_bf, wk_ref[h], preferred_element_type=f32)
           for h in range(nhead)]                            # nhead x [B*S, D]
    v_h = [jnp.dot(s_bf, wv_ref[h], preferred_element_type=f32)
           for h in range(nhead)]

    def dot_nt(a, b):  # a [L, D] . b[S, D]^T -> [L, S] without explicit .T
        return lax.dot_general(a, b, (((1,), (1,)), ((), ())),
                               preferred_element_type=f32)

    # ---- per-(batch, head) softmax attention; head outputs are accumulated
    # straight into the merge projection (msg += o_h @ wm[h]) -> no concat.
    msg_rows = []
    for b in range(B):
        acc = jnp.zeros((L, C), f32)
        for h in range(nhead):
            qh = q_h[h][b * L:(b + 1) * L].astype(bf16)      # [L, D]
            kh = k_h[h][b * S:(b + 1) * S].astype(bf16)      # [S, D]
            vh = v_h[h][b * S:(b + 1) * S].astype(bf16)      # [S, D]
            sc = dot_nt(qh, kh)                              # [L, S] f32
            sc = sc - jnp.max(sc, axis=-1, keepdims=True)
            p = jnp.exp(sc)                                  # f32 elementwise
            p = p * pl.reciprocal(jnp.sum(p, axis=-1, keepdims=True),
                                  approx=True)
            oh = jnp.dot(p.astype(bf16), vh, preferred_element_type=f32)  # [L, D]
            acc = acc + jnp.dot(oh.astype(bf16), wm_ref[h],
                                preferred_element_type=f32)               # [L, C]
        msg_rows.append(acc)
    msg = msg_rows[0] if B == 1 else jnp.concatenate(msg_rows, axis=0)    # [B*L, C]

    # ---- norm1, MLP([x, msg]) with split W1 (no concat), norm2, residual
    msg = _layernorm(msg, g1_ref[...], b1_ref[...])
    hid = (jnp.dot(x_bf, w1x_ref[...], preferred_element_type=f32)
           + jnp.dot(msg.astype(bf16), w1m_ref[...], preferred_element_type=f32))
    hid = jnp.maximum(hid, 0.0)                              # [B*L, 2C]
    out = jnp.dot(hid.astype(bf16), w2_ref[...], preferred_element_type=f32)
    out = _layernorm(out, g2_ref[...], b2_ref[...])          # [B*L, C]

    o_ref[...] = (x2d.astype(f32) + out).reshape(B, L, C).astype(o_ref.dtype)


# ----------------------------------------------------------------------------
# Wrapper
# ----------------------------------------------------------------------------
def _resident(shape):
    """BlockSpec for a full-array weight that stays resident across the grid."""
    zeros = (0,) * len(shape)
    return pl.BlockSpec(shape, lambda i, _z=zeros: _z)


def _choose_batch_block(n, max_block=4):
    # Amortize per-step overhead over several batch elements, but keep >= 2
    # grid steps when possible so both v7x TensorCores get work.
    upper = min(max_block, max(1, n // 2))
    for b in range(upper, 0, -1):
        if n % b == 0:
            return b
    return 1


def _vmem_limit_bytes(b_blk, L, S, C, nhead):
    D = C // nhead
    blk_io = 4 * b_blk * (2 * L * C + S * C)                 # x, out, src blocks (f32)
    w_elems = (3 * nhead * C * D + nhead * D * C             # qkv + merge
               + 2 * (C * 2 * C) + 2 * C * C)                # w1x/w1m + w2
    weights = 2 * w_elems + 4 * (4 * C)                      # bf16 weights + f32 norms
    live = 4 * b_blk * (5 * L * C + 2 * S * C) + 4 * L * S   # in-kernel live values
    need = 2 * (blk_io + weights) + live                     # 2x: double buffering
    return max(min(4 * need, 48 * 1024 * 1024), 16 * 1024 * 1024)


def cross_attention_forward(params, x, source, nhead,
                            epipolar_info=None, direction="0to1",
                            x_mask=None, source_mask=None):
    # TODO(synk): dense-attention fallback (no epipolar candidate restriction).
    if x_mask is not None or source_mask is not None:
        raise NotImplementedError(
            "x_mask / source_mask are not supported by the dense fallback")
    del epipolar_info, direction

    N, L, C = x.shape
    S = source.shape[1]
    D = C // nhead
    scale = 1.0 / (D ** 0.5)
    b_blk = _choose_batch_block(N)

    kernel = functools.partial(_cross_attn_kernel, nhead=nhead, scale=scale)
    return pl.pallas_call(
        kernel,
        out_shape=jax.ShapeDtypeStruct((N, L, C), x.dtype),
        grid=(N // b_blk,),
        in_specs=[
            pl.BlockSpec((b_blk, L, C), lambda i: (i, 0, 0)),   # x (per-batch block)
            pl.BlockSpec((b_blk, S, C), lambda i: (i, 0, 0)),   # source
            _resident((nhead, C, D)),    # wq, per-head column split (bf16)
            _resident((nhead, C, D)),    # wk
            _resident((nhead, C, D)),    # wv
            _resident((nhead, D, C)),    # wm, per-head row split (bf16)
            _resident((1, C)),           # norm1 gamma (f32)
            _resident((1, C)),           # norm1 beta
            _resident((C, 2 * C)),       # w1 top half  (acts on x, bf16)
            _resident((C, 2 * C)),       # w1 bottom half (acts on msg, bf16)
            _resident((2 * C, C)),       # w2 (bf16)
            _resident((1, C)),           # norm2 gamma
            _resident((1, C)),           # norm2 beta
        ],
        out_specs=pl.BlockSpec((b_blk, L, C), lambda i: (i, 0, 0)),
        compiler_params=pltpu.CompilerParams(
            dimension_semantics=("parallel",),      # v7x: split steps across TCs
            vmem_limit_bytes=_vmem_limit_bytes(b_blk, L, S, C, nhead),
        ),
    )(x, source,
      params["wq_h"], params["wk_h"], params["wv_h"], params["wm_h"],
      params["g1"], params["b1"],
      params["w1x"], params["w1m"], params["w2b"],
      params["g2"], params["b2"])


# ----------------------------------------------------------------------------
# Params + pure-JAX reference (for correctness check)
# ----------------------------------------------------------------------------
def init_params(key, d_model):
    ks = jax.random.split(key, 6)
    std = 0.05
    f32 = jnp.float32
    wq = jax.random.normal(ks[0], (d_model, d_model), f32) * std
    wk = jax.random.normal(ks[1], (d_model, d_model), f32) * std
    wv = jax.random.normal(ks[2], (d_model, d_model), f32) * std
    wm = jax.random.normal(ks[3], (d_model, d_model), f32) * std
    w1 = jax.random.normal(ks[4], (2 * d_model, 2 * d_model), f32) * std
    w2 = jax.random.normal(ks[5], (2 * d_model, d_model), f32) * std
    return {"wq": wq, "wk": wk, "wv": wv, "wm": wm, "w1": w1, "w2": w2,
            "g1": jnp.ones((1, d_model), f32), "b1": jnp.zeros((1, d_model), f32),
            "g2": jnp.ones((1, d_model), f32), "b2": jnp.zeros((1, d_model), f32)}


def prepare_kernel_params(params, nhead):
    """Pre-split per head / pre-cast to bf16 the weights the kernel consumes."""
    C = params["wq"].shape[0]
    D = C // nhead
    bf16 = jnp.bfloat16
    split_cols = lambda w: w.reshape(C, nhead, D).transpose(1, 0, 2)  # [h, C, D]
    kp = dict(params)
    kp.update(
        wq_h=split_cols(params["wq"]).astype(bf16),
        wk_h=split_cols(params["wk"]).astype(bf16),
        wv_h=split_cols(params["wv"]).astype(bf16),
        wm_h=params["wm"].reshape(nhead, D, C).astype(bf16),
        w1x=params["w1"][:C, :].astype(bf16),
        w1m=params["w1"][C:, :].astype(bf16),
        w2b=params["w2"].astype(bf16),
    )
    return kp


def cross_attention_ref(params, x, source, nhead):
    """Pure-JAX reference of the PyTorch forward, using the same bf16-operand /
    f32-accumulation matmul precision as the kernel (elementwise in f32)."""
    bf16, f32 = jnp.bfloat16, jnp.float32
    mm = lambda a, b: jnp.matmul(a.astype(bf16), b.astype(bf16),
                                 preferred_element_type=f32)
    N, L, C = x.shape
    S = source.shape[1]
    D = C // nhead
    q = mm(x, params["wq"]).reshape(N, L, nhead, D)
    k = mm(source, params["wk"]).reshape(N, S, nhead, D)
    v = mm(source, params["wv"]).reshape(N, S, nhead, D)
    s = jnp.einsum("nlhd,nshd->nhls", q.astype(bf16), k.astype(bf16),
                   preferred_element_type=f32) / (D ** 0.5)
    p = jax.nn.softmax(s, axis=-1)
    msg = jnp.einsum("nhls,nshd->nlhd", p.astype(bf16), v.astype(bf16),
                     preferred_element_type=f32).reshape(N, L, C)
    msg = mm(msg, params["wm"])

    def ln(z, g, b, eps=1e-5):
        mu = jnp.mean(z, axis=-1, keepdims=True)
        var = jnp.mean((z - mu) ** 2, axis=-1, keepdims=True)
        return (z - mu) * lax.rsqrt(var + eps) * g + b

    msg = ln(msg, params["g1"], params["b1"])
    hid = jnp.maximum(mm(jnp.concatenate([x, msg], axis=-1), params["w1"]), 0.0)
    msg = ln(mm(hid, params["w2"]), params["g2"], params["b2"])
    return x + msg


# ----------------------------------------------------------------------------
if __name__ == "__main__":
    d_model, nhead = 32, 4
    area_width = 5  # One2ManyAttention config; unused in dense fallback

    root = jax.random.PRNGKey(0)
    kparams, kdata = jax.random.split(root)
    params = prepare_kernel_params(init_params(kparams, d_model), nhead)

    # case 1: N=2 (one batch element per step -> both v7x TCs get work)
    # case 2: N=8, S != L (exercises the multi-batch-per-step block path)
    for (N, L, S) in [(2, 16, 16), (8, 16, 24)]:
        kx, ksrc, kdata = jax.random.split(kdata, 3)
        x = jax.random.normal(kx, (N, L, d_model), jnp.float32)
        source = jax.random.normal(ksrc, (N, S, d_model), jnp.float32)

        out = jax.block_until_ready(
            cross_attention_forward(params, x, source, nhead,
                                    epipolar_info={}, direction="0to1"))
        ref = jax.block_until_ready(cross_attention_ref(params, x, source, nhead))

        assert out.shape == (N, L, d_model)
        assert bool(jnp.all(jnp.isfinite(out)))
        max_err = float(jnp.max(jnp.abs(out - ref)))
        assert jnp.allclose(out, ref, rtol=2e-2, atol=2e-2), max_err

    print("KERNEL_OK")
</pallas_src>

<mosaic_0001>
module attributes {stable_mosaic.version = 11 : i64} {
  func.func @_cross_attn_kernel(%arg0: i32, %arg1: memref<1x16x32xf32, #tpu.memory_space<vmem>>, %arg2: memref<1x16x32xf32, #tpu.memory_space<vmem>>, %arg3: memref<4x32x8xbf16, #tpu.memory_space<vmem>>, %arg4: memref<4x32x8xbf16, #tpu.memory_space<vmem>>, %arg5: memref<4x32x8xbf16, #tpu.memory_space<vmem>>, %arg6: memref<4x8x32xbf16, #tpu.memory_space<vmem>>, %arg7: memref<1x32xf32, #tpu.memory_space<vmem>>, %arg8: memref<1x32xf32, #tpu.memory_space<vmem>>, %arg9: memref<32x64xbf16, #tpu.memory_space<vmem>>, %arg10: memref<32x64xbf16, #tpu.memory_space<vmem>>, %arg11: memref<64x32xbf16, #tpu.memory_space<vmem>>, %arg12: memref<1x32xf32, #tpu.memory_space<vmem>>, %arg13: memref<1x32xf32, #tpu.memory_space<vmem>>, %arg14: memref<1x16x32xf32, #tpu.memory_space<vmem>>) attributes {dimension_semantics = [#tpu.dimension_semantics<parallel>], iteration_bounds = array<i64: 2>, scalar_prefetch = 0 : i64, scratch_operands = 0 : i64, tpu.core_type = #tpu.core_type<tc>, window_params = [{transform_indices = @transform_0, window_bounds = array<i64: 1, 16, 32>}, {transform_indices = @transform_1, window_bounds = array<i64: 1, 16, 32>}, {pipeline_mode = #tpu.pipeline_mode<synchronous>, transform_indices = @transform_2, window_bounds = array<i64: 4, 32, 8>}, {pipeline_mode = #tpu.pipeline_mode<synchronous>, transform_indices = @transform_3, window_bounds = array<i64: 4, 32, 8>}, {pipeline_mode = #tpu.pipeline_mode<synchronous>, transform_indices = @transform_4, window_bounds = array<i64: 4, 32, 8>}, {pipeline_mode = #tpu.pipeline_mode<synchronous>, transform_indices = @transform_5, window_bounds = array<i64: 4, 8, 32>}, {pipeline_mode = #tpu.pipeline_mode<synchronous>, transform_indices = @transform_6, window_bounds = array<i64: 1, 32>}, {pipeline_mode = #tpu.pipeline_mode<synchronous>, transform_indices = @transform_7, window_bounds = array<i64: 1, 32>}, {pipeline_mode = #tpu.pipeline_mode<synchronous>, transform_indices = @transform_8, window_bounds = array<i64: 32, 64>}, {pipeline_mode = #tpu.pipeline_mode<synchronous>, transform_indices = @transform_9, window_bounds = array<i64: 32, 64>}, {pipeline_mode = #tpu.pipeline_mode<synchronous>, transform_indices = @transform_10, window_bounds = array<i64: 64, 32>}, {pipeline_mode = #tpu.pipeline_mode<synchronous>, transform_indices = @transform_11, window_bounds = array<i64: 1, 32>}, {pipeline_mode = #tpu.pipeline_mode<synchronous>, transform_indices = @transform_12, window_bounds = array<i64: 1, 32>}, {transform_indices = @transform_13, window_bounds = array<i64: 1, 16, 32>}]} {
    %c0 = arith.constant 0 : index
    %c0_0 = arith.constant 0 : index
    %c0_1 = arith.constant 0 : index
    %0 = vector.load %arg1[%c0, %c0_0, %c0_1] : memref<1x16x32xf32, #tpu.memory_space<vmem>>, vector<1x16x32xf32>
    %1 = vector.shape_cast %0 : vector<1x16x32xf32> to vector<16x32xf32>
    %2 = arith.truncf %1 : vector<16x32xf32> to vector<16x32xbf16>
    %c0_2 = arith.constant 0 : index
    %c0_3 = arith.constant 0 : index
    %c0_4 = arith.constant 0 : index
    %3 = vector.load %arg2[%c0_2, %c0_3, %c0_4] : memref<1x16x32xf32, #tpu.memory_space<vmem>>, vector<1x16x32xf32>
    %4 = vector.shape_cast %3 : vector<1x16x32xf32> to vector<16x32xf32>
    %5 = arith.truncf %4 : vector<16x32xf32> to vector<16x32xbf16>
    %c0_5 = arith.constant 0 : index
    %c0_6 = arith.constant 0 : index
    %c0_7 = arith.constant 0 : index
    %6 = vector.load %arg3[%c0_5, %c0_6, %c0_7] : memref<4x32x8xbf16, #tpu.memory_space<vmem>>, vector<1x32x8xbf16>
    %7 = vector.shape_cast %6 : vector<1x32x8xbf16> to vector<32x8xbf16>
    %cst = arith.constant dense<0.000000e+00> : vector<16x8xf32>
    %8 = tpu.matmul %2, %7, %cst {dimension_numbers = #tpu.dot_dimension_numbers<[1], [0], [0], [1], [0, 0, 1, 1], [], []>} : vector<16x32xbf16>, vector<32x8xbf16>, vector<16x8xf32> -> vector<16x8xf32>
    %cst_8 = arith.constant 0.353553385 : f32
    %9 = vector.broadcast %cst_8 : f32 to vector<16x8xf32>
    %10 = arith.mulf %8, %9 : vector<16x8xf32>
    %c1 = arith.constant 1 : index
    %c0_9 = arith.constant 0 : index
    %c0_10 = arith.constant 0 : index
    %11 = vector.load %arg3[%c1, %c0_9, %c0_10] : memref<4x32x8xbf16, #tpu.memory_space<vmem>>, vector<1x32x8xbf16>
    %12 = vector.shape_cast %11 : vector<1x32x8xbf16> to vector<32x8xbf16>
    %cst_11 = arith.constant dense<0.000000e+00> : vector<16x8xf32>
    %13 = tpu.matmul %2, %12, %cst_11 {dimension_numbers = #tpu.dot_dimension_numbers<[1], [0], [0], [1], [0, 0, 1, 1], [], []>} : vector<16x32xbf16>, vector<32x8xbf16>, vector<16x8xf32> -> vector<16x8xf32>
    %cst_12 = arith.constant 0.353553385 : f32
    %14 = vector.broadcast %cst_12 : f32 to vector<16x8xf32>
    %15 = arith.mulf %13, %14 : vector<16x8xf32>
    %c2 = arith.constant 2 : index
    %c0_13 = arith.constant 0 : index
    %c0_14 = arith.constant 0 : index
    %16 = vector.load %arg3[%c2, %c0_13, %c0_14] : memref<4x32x8xbf16, #tpu.memory_space<vmem>>, vector<1x32x8xbf16>
    %17 = vector.shape_cast %16 : vector<1x32x8xbf16> to vector<32x8xbf16>
    %cst_15 = arith.constant dense<0.000000e+00> : vector<16x8xf32>
    %18 = tpu.matmul %2, %17, %cst_15 {dimension_numbers = #tpu.dot_dimension_numbers<[1], [0], [0], [1], [0, 0, 1, 1], [], []>} : vector<16x32xbf16>, vector<32x8xbf16>, vector<16x8xf32> -> vector<16x8xf32>
    %cst_16 = arith.constant 0.353553385 : f32
    %19 = vector.broadcast %cst_16 : f32 to vector<16x8xf32>
    %20 = arith.mulf %18, %19 : vector<16x8xf32>
    %c3 = arith.constant 3 : index
    %c0_17 = arith.constant 0 : index
    %c0_18 = arith.constant 0 : index
    %21 = vector.load %arg3[%c3, %c0_17, %c0_18] : memref<4x32x8xbf16, #tpu.memory_space<vmem>>, vector<1x32x8xbf16>
    %22 = vector.shape_cast %21 : vector<1x32x8xbf16> to vector<32x8xbf16>
    %cst_19 = arith.constant dense<0.000000e+00> : vector<16x8xf32>
    %23 = tpu.matmul %2, %22, %cst_19 {dimension_numbers = #tpu.dot_dimension_numbers<[1], [0], [0], [1], [0, 0, 1, 1], [], []>} : vector<16x32xbf16>, vector<32x8xbf16>, vector<16x8xf32> -> vector<16x8xf32>
    %cst_20 = arith.constant 0.353553385 : f32
    %24 = vector.broadcast %cst_20 : f32 to vector<16x8xf32>
    %25 = arith.mulf %23, %24 : vector<16x8xf32>
    %c0_21 = arith.constant 0 : index
    %c0_22 = arith.constant 0 : index
    %c0_23 = arith.constant 0 : index
    %26 = vector.load %arg4[%c0_21, %c0_22, %c0_23] : memref<4x32x8xbf16, #tpu.memory_space<vmem>>, vector<1x32x8xbf16>
    %27 = vector.shape_cast %26 : vector<1x32x8xbf16> to vector<32x8xbf16>
    %cst_24 = arith.constant dense<0.000000e+00> : vector<16x8xf32>
    %28 = tpu.matmul %5, %27, %cst_24 {dimension_numbers = #tpu.dot_dimension_numbers<[1], [0], [0], [1], [0, 0, 1, 1], [], []>} : vector<16x32xbf16>, vector<32x8xbf16>, vector<16x8xf32> -> vector<16x8xf32>
    %c1_25 = arith.constant 1 : index
    %c0_26 = arith.constant 0 : index
    %c0_27 = arith.constant 0 : index
    %29 = vector.load %arg4[%c1_25, %c0_26, %c0_27] : memref<4x32x8xbf16, #tpu.memory_space<vmem>>, vector<1x32x8xbf16>
    %30 = vector.shape_cast %29 : vector<1x32x8xbf16> to vector<32x8xbf16>
    %cst_28 = arith.constant dense<0.000000e+00> : vector<16x8xf32>
    %31 = tpu.matmul %5, %30, %cst_28 {dimension_numbers = #tpu.dot_dimension_numbers<[1], [0], [0], [1], [0, 0, 1, 1], [], []>} : vector<16x32xbf16>, vector<32x8xbf16>, vector<16x8xf32> -> vector<16x8xf32>
    %c2_29 = arith.constant 2 : index
    %c0_30 = arith.constant 0 : index
    %c0_31 = arith.constant 0 : index
    %32 = vector.load %arg4[%c2_29, %c0_30, %c0_31] : memref<4x32x8xbf16, #tpu.memory_space<vmem>>, vector<1x32x8xbf16>
    %33 = vector.shape_cast %32 : vector<1x32x8xbf16> to vector<32x8xbf16>
    %cst_32 = arith.constant dense<0.000000e+00> : vector<16x8xf32>
    %34 = tpu.matmul %5, %33, %cst_32 {dimension_numbers = #tpu.dot_dimension_numbers<[1], [0], [0], [1], [0, 0, 1, 1], [], []>} : vector<16x32xbf16>, vector<32x8xbf16>, vector<16x8xf32> -> vector<16x8xf32>
    %c3_33 = arith.constant 3 : index
    %c0_34 = arith.constant 0 : index
    %c0_35 = arith.constant 0 : index
    %35 = vector.load %arg4[%c3_33, %c0_34, %c0_35] : memref<4x32x8xbf16, #tpu.memory_space<vmem>>, vector<1x32x8xbf16>
    %36 = vector.shape_cast %35 : vector<1x32x8xbf16> to vector<32x8xbf16>
    %cst_36 = arith.constant dense<0.000000e+00> : vector<16x8xf32>
    %37 = tpu.matmul %5, %36, %cst_36 {dimension_numbers = #tpu.dot_dimension_numbers<[1], [0], [0], [1], [0, 0, 1, 1], [], []>} : vector<16x32xbf16>, vector<32x8xbf16>, vector<16x8xf32> -> vector<16x8xf32>
    %c0_37 = arith.constant 0 : index
    %c0_38 = arith.constant 0 : index
    %c0_39 = arith.constant 0 : index
    %38 = vector.load %arg5[%c0_37, %c0_38, %c0_39] : memref<4x32x8xbf16, #tpu.memory_space<vmem>>, vector<1x32x8xbf16>
    %39 = vector.shape_cast %38 : vector<1x32x8xbf16> to vector<32x8xbf16>
    %cst_40 = arith.constant dense<0.000000e+00> : vector<16x8xf32>
    %40 = tpu.matmul %5, %39, %cst_40 {dimension_numbers = #tpu.dot_dimension_numbers<[1], [0], [0], [1], [0, 0, 1, 1], [], []>} : vector<16x32xbf16>, vector<32x8xbf16>, vector<16x8xf32> -> vector<16x8xf32>
    %c1_41 = arith.constant 1 : index
    %c0_42 = arith.constant 0 : index
    %c0_43 = arith.constant 0 : index
    %41 = vector.load %arg5[%c1_41, %c0_42, %c0_43] : memref<4x32x8xbf16, #tpu.memory_space<vmem>>, vector<1x32x8xbf16>
    %42 = vector.shape_cast %41 : vector<1x32x8xbf16> to vector<32x8xbf16>
    %cst_44 = arith.constant dense<0.000000e+00> : vector<16x8xf32>
    %43 = tpu.matmul %5, %42, %cst_44 {dimension_numbers = #tpu.dot_dimension_numbers<[1], [0], [0], [1], [0, 0, 1, 1], [], []>} : vector<16x32xbf16>, vector<32x8xbf16>, vector<16x8xf32> -> vector<16x8xf32>
    %c2_45 = arith.constant 2 : index
    %c0_46 = arith.constant 0 : index
    %c0_47 = arith.constant 0 : index
    %44 = vector.load %arg5[%c2_45, %c0_46, %c0_47] : memref<4x32x8xbf16, #tpu.memory_space<vmem>>, vector<1x32x8xbf16>
    %45 = vector.shape_cast %44 : vector<1x32x8xbf16> to vector<32x8xbf16>
    %cst_48 = arith.constant dense<0.000000e+00> : vector<16x8xf32>
    %46 = tpu.matmul %5, %45, %cst_48 {dimension_numbers = #tpu.dot_dimension_numbers<[1], [0], [0], [1], [0, 0, 1, 1], [], []>} : vector<16x32xbf16>, vector<32x8xbf16>, vector<16x8xf32> -> vector<16x8xf32>
    %c3_49 = arith.constant 3 : index
    %c0_50 = arith.constant 0 : index
    %c0_51 = arith.constant 0 : index
    %47 = vector.load %arg5[%c3_49, %c0_50, %c0_51] : memref<4x32x8xbf16, #tpu.memory_space<vmem>>, vector<1x32x8xbf16>
    %48 = vector.shape_cast %47 : vector<1x32x8xbf16> to vector<32x8xbf16>
    %cst_52 = arith.constant dense<0.000000e+00> : vector<16x8xf32>
    %49 = tpu.matmul %5, %48, %cst_52 {dimension_numbers = #tpu.dot_dimension_numbers<[1], [0], [0], [1], [0, 0, 1, 1], [], []>} : vector<16x32xbf16>, vector<32x8xbf16>, vector<16x8xf32> -> vector<16x8xf32>
    %cst_53 = arith.constant 0.000000e+00 : f32
    %50 = vector.broadcast %cst_53 : f32 to vector<16x32xf32>
    %51 = arith.truncf %10 : vector<16x8xf32> to vector<16x8xbf16>
    %52 = arith.truncf %28 : vector<16x8xf32> to vector<16x8xbf16>
    %53 = arith.truncf %40 : vector<16x8xf32> to vector<16x8xbf16>
    %cst_54 = arith.constant dense<0.000000e+00> : vector<16x16xf32>
    %54 = tpu.matmul %51, %52, %cst_54 {dimension_numbers = #tpu.dot_dimension_numbers<[1], [1], [0], [0], [0, 0, 1, 0], [], []>} : vector<16x8xbf16>, vector<16x8xbf16>, vector<16x16xf32> -> vector<16x16xf32>
    %cst_55 = arith.constant dense<0xFF800000> : vector<16xf32>
    %55 = vector.multi_reduction <maximumf>, %54, %cst_55 [1] : vector<16x16xf32> to vector<16xf32>
    %56 = vector.shape_cast %55 : vector<16xf32> to vector<16x1xf32>
    %57 = vector.broadcast %56 : vector<16x1xf32> to vector<16x16xf32>
    %58 = arith.subf %54, %57 : vector<16x16xf32>
    %59 = math.exp %58 : vector<16x16xf32>
    %cst_56 = arith.constant dense<0.000000e+00> : vector<16xf32>
    %60 = vector.multi_reduction <add>, %59, %cst_56 [1] : vector<16x16xf32> to vector<16xf32>
    %61 = vector.shape_cast %60 : vector<16xf32> to vector<16x1xf32>
    %62 = tpu.reciprocal %61 {approx = true} : vector<16x1xf32> -> vector<16x1xf32>
    %63 = vector.broadcast %62 : vector<16x1xf32> to vector<16x16xf32>
    %64 = arith.mulf %59, %63 : vector<16x16xf32>
    %65 = arith.truncf %64 : vector<16x16xf32> to vector<16x16xbf16>
    %cst_57 = arith.constant dense<0.000000e+00> : vector<16x8xf32>
    %66 = tpu.matmul %65, %53, %cst_57 {dimension_numbers = #tpu.dot_dimension_numbers<[1], [0], [0], [1], [0, 0, 1, 1], [], []>} : vector<16x16xbf16>, vector<16x8xbf16>, vector<16x8xf32> -> vector<16x8xf32>
    %67 = arith.truncf %66 : vector<16x8xf32> to vector<16x8xbf16>
    %c0_58 = arith.constant 0 : index
    %c0_59 = arith.constant 0 : index
    %c0_60 = arith.constant 0 : index
    %68 = vector.load %arg6[%c0_58, %c0_59, %c0_60] : memref<4x8x32xbf16, #tpu.memory_space<vmem>>, vector<1x8x32xbf16>
    %69 = vector.shape_cast %68 : vector<1x8x32xbf16> to vector<8x32xbf16>
    %cst_61 = arith.constant dense<0.000000e+00> : vector<16x32xf32>
    %70 = tpu.matmul %67, %69, %cst_61 {dimension_numbers = #tpu.dot_dimension_numbers<[1], [0], [0], [1], [0, 0, 1, 1], [], []>} : vector<16x8xbf16>, vector<8x32xbf16>, vector<16x32xf32> -> vector<16x32xf32>
    %71 = arith.addf %50, %70 : vector<16x32xf32>
    %72 = arith.truncf %15 : vector<16x8xf32> to vector<16x8xbf16>
    %73 = arith.truncf %31 : vector<16x8xf32> to vector<16x8xbf16>
    %74 = arith.truncf %43 : vector<16x8xf32> to vector<16x8xbf16>
    %cst_62 = arith.constant dense<0.000000e+00> : vector<16x16xf32>
    %75 = tpu.matmul %72, %73, %cst_62 {dimension_numbers = #tpu.dot_dimension_numbers<[1], [1], [0], [0], [0, 0, 1, 0], [], []>} : vector<16x8xbf16>, vector<16x8xbf16>, vector<16x16xf32> -> vector<16x16xf32>
    %cst_63 = arith.constant dense<0xFF800000> : vector<16xf32>
    %76 = vector.multi_reduction <maximumf>, %75, %cst_63 [1] : vector<16x16xf32> to vector<16xf32>
    %77 = vector.shape_cast %76 : vector<16xf32> to vector<16x1xf32>
    %78 = vector.broadcast %77 : vector<16x1xf32> to vector<16x16xf32>
    %79 = arith.subf %75, %78 : vector<16x16xf32>
    %80 = math.exp %79 : vector<16x16xf32>
    %cst_64 = arith.constant dense<0.000000e+00> : vector<16xf32>
    %81 = vector.multi_reduction <add>, %80, %cst_64 [1] : vector<16x16xf32> to vector<16xf32>
    %82 = vector.shape_cast %81 : vector<16xf32> to vector<16x1xf32>
    %83 = tpu.reciprocal %82 {approx = true} : vector<16x1xf32> -> vector<16x1xf32>
    %84 = vector.broadcast %83 : vector<16x1xf32> to vector<16x16xf32>
    %85 = arith.mulf %80, %84 : vector<16x16xf32>
    %86 = arith.truncf %85 : vector<16x16xf32> to vector<16x16xbf16>
    %cst_65 = arith.constant dense<0.000000e+00> : vector<16x8xf32>
    %87 = tpu.matmul %86, %74, %cst_65 {dimension_numbers = #tpu.dot_dimension_numbers<[1], [0], [0], [1], [0, 0, 1, 1], [], []>} : vector<16x16xbf16>, vector<16x8xbf16>, vector<16x8xf32> -> vector<16x8xf32>
    %88 = arith.truncf %87 : vector<16x8xf32> to vector<16x8xbf16>
    %c1_66 = arith.constant 1 : index
    %c0_67 = arith.constant 0 : index
    %c0_68 = arith.constant 0 : index
    %89 = vector.load %arg6[%c1_66, %c0_67, %c0_68] : memref<4x8x32xbf16, #tpu.memory_space<vmem>>, vector<1x8x32xbf16>
    %90 = vector.shape_cast %89 : vector<1x8x32xbf16> to vector<8x32xbf16>
    %cst_69 = arith.constant dense<0.000000e+00> : vector<16x32xf32>
    %91 = tpu.matmul %88, %90, %cst_69 {dimension_numbers = #tpu.dot_dimension_numbers<[1], [0], [0], [1], [0, 0, 1, 1], [], []>} : vector<16x8xbf16>, vector<8x32xbf16>, vector<16x32xf32> -> vector<16x32xf32>
    %92 = arith.addf %71, %91 : vector<16x32xf32>
    %93 = arith.truncf %20 : vector<16x8xf32> to vector<16x8xbf16>
    %94 = arith.truncf %34 : vector<16x8xf32> to vector<16x8xbf16>
    %95 = arith.truncf %46 : vector<16x8xf32> to vector<16x8xbf16>
    %cst_70 = arith.constant dense<0.000000e+00> : vector<16x16xf32>
    %96 = tpu.matmul %93, %94, %cst_70 {dimension_numbers = #tpu.dot_dimension_numbers<[1], [1], [0], [0], [0, 0, 1, 0], [], []>} : vector<16x8xbf16>, vector<16x8xbf16>, vector<16x16xf32> -> vector<16x16xf32>
    %cst_71 = arith.constant dense<0xFF800000> : vector<16xf32>
    %97 = vector.multi_reduction <maximumf>, %96, %cst_71 [1] : vector<16x16xf32> to vector<16xf32>
    %98 = vector.shape_cast %97 : vector<16xf32> to vector<16x1xf32>
    %99 = vector.broadcast %98 : vector<16x1xf32> to vector<16x16xf32>
    %100 = arith.subf %96, %99 : vector<16x16xf32>
    %101 = math.exp %100 : vector<16x16xf32>
    %cst_72 = arith.constant dense<0.000000e+00> : vector<16xf32>
    %102 = vector.multi_reduction <add>, %101, %cst_72 [1] : vector<16x16xf32> to vector<16xf32>
    %103 = vector.shape_cast %102 : vector<16xf32> to vector<16x1xf32>
    %104 = tpu.reciprocal %103 {approx = true} : vector<16x1xf32> -> vector<16x1xf32>
    %105 = vector.broadcast %104 : vector<16x1xf32> to vector<16x16xf32>
    %106 = arith.mulf %101, %105 : vector<16x16xf32>
    %107 = arith.truncf %106 : vector<16x16xf32> to vector<16x16xbf16>
    %cst_73 = arith.constant dense<0.000000e+00> : vector<16x8xf32>
    %108 = tpu.matmul %107, %95, %cst_73 {dimension_numbers = #tpu.dot_dimension_numbers<[1], [0], [0], [1], [0, 0, 1, 1], [], []>} : vector<16x16xbf16>, vector<16x8xbf16>, vector<16x8xf32> -> vector<16x8xf32>
    %109 = arith.truncf %108 : vector<16x8xf32> to vector<16x8xbf16>
    %c2_74 = arith.constant 2 : index
    %c0_75 = arith.constant 0 : index
    %c0_76 = arith.constant 0 : index
    %110 = vector.load %arg6[%c2_74, %c0_75, %c0_76] : memref<4x8x32xbf16, #tpu.memory_space<vmem>>, vector<1x8x32xbf16>
    %111 = vector.shape_cast %110 : vector<1x8x32xbf16> to vector<8x32xbf16>
    %cst_77 = arith.constant dense<0.000000e+00> : vector<16x32xf32>
    %112 = tpu.matmul %109, %111, %cst_77 {dimension_numbers = #tpu.dot_dimension_numbers<[1], [0], [0], [1], [0, 0, 1, 1], [], []>} : vector<16x8xbf16>, vector<8x32xbf16>, vector<16x32xf32> -> vector<16x32xf32>
    %113 = arith.addf %92, %112 : vector<16x32xf32>
    %114 = arith.truncf %25 : vector<16x8xf32> to vector<16x8xbf16>
    %115 = arith.truncf %37 : vector<16x8xf32> to vector<16x8xbf16>
    %116 = arith.truncf %49 : vector<16x8xf32> to vector<16x8xbf16>
    %cst_78 = arith.constant dense<0.000000e+00> : vector<16x16xf32>
    %117 = tpu.matmul %114, %115, %cst_78 {dimension_numbers = #tpu.dot_dimension_numbers<[1], [1], [0], [0], [0, 0, 1, 0], [], []>} : vector<16x8xbf16>, vector<16x8xbf16>, vector<16x16xf32> -> vector<16x16xf32>
    %cst_79 = arith.constant dense<0xFF800000> : vector<16xf32>
    %118 = vector.multi_reduction <maximumf>, %117, %cst_79 [1] : vector<16x16xf32> to vector<16xf32>
    %119 = vector.shape_cast %118 : vector<16xf32> to vector<16x1xf32>
    %120 = vector.broadcast %119 : vector<16x1xf32> to vector<16x16xf32>
    %121 = arith.subf %117, %120 : vector<16x16xf32>
    %122 = math.exp %121 : vector<16x16xf32>
    %cst_80 = arith.constant dense<0.000000e+00> : vector<16xf32>
    %123 = vector.multi_reduction <add>, %122, %cst_80 [1] : vector<16x16xf32> to vector<16xf32>
    %124 = vector.shape_cast %123 : vector<16xf32> to vector<16x1xf32>
    %125 = tpu.reciprocal %124 {approx = true} : vector<16x1xf32> -> vector<16x1xf32>
    %126 = vector.broadcast %125 : vector<16x1xf32> to vector<16x16xf32>
    %127 = arith.mulf %122, %126 : vector<16x16xf32>
    %128 = arith.truncf %127 : vector<16x16xf32> to vector<16x16xbf16>
    %cst_81 = arith.constant dense<0.000000e+00> : vector<16x8xf32>
    %129 = tpu.matmul %128, %116, %cst_81 {dimension_numbers = #tpu.dot_dimension_numbers<[1], [0], [0], [1], [0, 0, 1, 1], [], []>} : vector<16x16xbf16>, vector<16x8xbf16>, vector<16x8xf32> -> vector<16x8xf32>
    %130 = arith.truncf %129 : vector<16x8xf32> to vector<16x8xbf16>
    %c3_82 = arith.constant 3 : index
    %c0_83 = arith.constant 0 : index
    %c0_84 = arith.constant 0 : index
    %131 = vector.load %arg6[%c3_82, %c0_83, %c0_84] : memref<4x8x32xbf16, #tpu.memory_space<vmem>>, vector<1x8x32xbf16>
    %132 = vector.shape_cast %131 : vector<1x8x32xbf16> to vector<8x32xbf16>
    %cst_85 = arith.constant dense<0.000000e+00> : vector<16x32xf32>
    %133 = tpu.matmul %130, %132, %cst_85 {dimension_numbers = #tpu.dot_dimension_numbers<[1], [0], [0], [1], [0, 0, 1, 1], [], []>} : vector<16x8xbf16>, vector<8x32xbf16>, vector<16x32xf32> -> vector<16x32xf32>
    %134 = arith.addf %113, %133 : vector<16x32xf32>
    %c0_86 = arith.constant 0 : index
    %c0_87 = arith.constant 0 : index
    %135 = vector.load %arg7[%c0_86, %c0_87] : memref<1x32xf32, #tpu.memory_space<vmem>>, vector<1x32xf32>
    %c0_88 = arith.constant 0 : index
    %c0_89 = arith.constant 0 : index
    %136 = vector.load %arg8[%c0_88, %c0_89] : memref<1x32xf32, #tpu.memory_space<vmem>>, vector<1x32xf32>
    %cst_90 = arith.constant dense<0.000000e+00> : vector<16xf32>
    %137 = vector.multi_reduction <add>, %134, %cst_90 [1] : vector<16x32xf32> to vector<16xf32>
    %138 = vector.shape_cast %137 : vector<16xf32> to vector<16x1xf32>
    %cst_91 = arith.constant 3.200000e+01 : f32
    %139 = vector.broadcast %cst_91 : f32 to vector<16x1xf32>
    %140 = arith.divf %138, %139 : vector<16x1xf32>
    %141 = vector.broadcast %140 : vector<16x1xf32> to vector<16x32xf32>
    %142 = arith.subf %134, %141 : vector<16x32xf32>
    %143 = arith.mulf %142, %142 : vector<16x32xf32>
    %cst_92 = arith.constant dense<0.000000e+00> : vector<16xf32>
    %144 = vector.multi_reduction <add>, %143, %cst_92 [1] : vector<16x32xf32> to vector<16xf32>
    %145 = vector.shape_cast %144 : vector<16xf32> to vector<16x1xf32>
    %cst_93 = arith.constant 3.200000e+01 : f32
    %146 = vector.broadcast %cst_93 : f32 to vector<16x1xf32>
    %147 = arith.divf %145, %146 : vector<16x1xf32>
    %148 = vector.broadcast %140 : vector<16x1xf32> to vector<16x32xf32>
    %149 = arith.subf %134, %148 : vector<16x32xf32>
    %cst_94 = arith.constant 9.99999974E-6 : f32
    %150 = vector.broadcast %cst_94 : f32 to vector<16x1xf32>
    %151 = arith.addf %147, %150 : vector<16x1xf32>
    %152 = math.rsqrt %151 : vector<16x1xf32>
    %153 = vector.broadcast %152 : vector<16x1xf32> to vector<16x32xf32>
    %154 = arith.mulf %149, %153 : vector<16x32xf32>
    %155 = vector.broadcast %135 : vector<1x32xf32> to vector<16x32xf32>
    %156 = arith.mulf %154, %155 : vector<16x32xf32>
    %157 = vector.broadcast %136 : vector<1x32xf32> to vector<16x32xf32>
    %158 = arith.addf %156, %157 : vector<16x32xf32>
    %c0_95 = arith.constant 0 : index
    %c0_96 = arith.constant 0 : index
    %159 = vector.load %arg9[%c0_95, %c0_96] : memref<32x64xbf16, #tpu.memory_space<vmem>>, vector<32x64xbf16>
    %cst_97 = arith.constant dense<0.000000e+00> : vector<16x64xf32>
    %160 = tpu.matmul %2, %159, %cst_97 {dimension_numbers = #tpu.dot_dimension_numbers<[1], [0], [0], [1], [0, 0, 1, 1], [], []>} : vector<16x32xbf16>, vector<32x64xbf16>, vector<16x64xf32> -> vector<16x64xf32>
    %161 = arith.truncf %158 : vector<16x32xf32> to vector<16x32xbf16>
    %c0_98 = arith.constant 0 : index
    %c0_99 = arith.constant 0 : index
    %162 = vector.load %arg10[%c0_98, %c0_99] : memref<32x64xbf16, #tpu.memory_space<vmem>>, vector<32x64xbf16>
    %cst_100 = arith.constant dense<0.000000e+00> : vector<16x64xf32>
    %163 = tpu.matmul %161, %162, %cst_100 {dimension_numbers = #tpu.dot_dimension_numbers<[1], [0], [0], [1], [0, 0, 1, 1], [], []>} : vector<16x32xbf16>, vector<32x64xbf16>, vector<16x64xf32> -> vector<16x64xf32>
    %164 = arith.addf %160, %163 : vector<16x64xf32>
    %cst_101 = arith.constant 0.000000e+00 : f32
    %165 = vector.broadcast %cst_101 : f32 to vector<16x64xf32>
    %166 = arith.maximumf %164, %165 : vector<16x64xf32>
    %167 = arith.truncf %166 : vector<16x64xf32> to vector<16x64xbf16>
    %c0_102 = arith.constant 0 : index
    %c0_103 = arith.constant 0 : index
    %168 = vector.load %arg11[%c0_102, %c0_103] : memref<64x32xbf16, #tpu.memory_space<vmem>>, vector<64x32xbf16>
    %cst_104 = arith.constant dense<0.000000e+00> : vector<16x32xf32>
    %169 = tpu.matmul %167, %168, %cst_104 {dimension_numbers = #tpu.dot_dimension_numbers<[1], [0], [0], [1], [0, 0, 1, 1], [], []>} : vector<16x64xbf16>, vector<64x32xbf16>, vector<16x32xf32> -> vector<16x32xf32>
    %c0_105 = arith.constant 0 : index
    %c0_106 = arith.constant 0 : index
    %170 = vector.load %arg12[%c0_105, %c0_106] : memref<1x32xf32, #tpu.memory_space<vmem>>, vector<1x32xf32>
    %c0_107 = arith.constant 0 : index
    %c0_108 = arith.constant 0 : index
    %171 = vector.load %arg13[%c0_107, %c0_108] : memref<1x32xf32, #tpu.memory_space<vmem>>, vector<1x32xf32>
    %cst_109 = arith.constant dense<0.000000e+00> : vector<16xf32>
    %172 = vector.multi_reduction <add>, %169, %cst_109 [1] : vector<16x32xf32> to vector<16xf32>
    %173 = vector.shape_cast %172 : vector<16xf32> to vector<16x1xf32>
    %cst_110 = arith.constant 3.200000e+01 : f32
    %174 = vector.broadcast %cst_110 : f32 to vector<16x1xf32>
    %175 = arith.divf %173, %174 : vector<16x1xf32>
    %176 = vector.broadcast %175 : vector<16x1xf32> to vector<16x32xf32>
    %177 = arith.subf %169, %176 : vector<16x32xf32>
    %178 = arith.mulf %177, %177 : vector<16x32xf32>
    %cst_111 = arith.constant dense<0.000000e+00> : vector<16xf32>
    %179 = vector.multi_reduction <add>, %178, %cst_111 [1] : vector<16x32xf32> to vector<16xf32>
    %180 = vector.shape_cast %179 : vector<16xf32> to vector<16x1xf32>
    %cst_112 = arith.constant 3.200000e+01 : f32
    %181 = vector.broadcast %cst_112 : f32 to vector<16x1xf32>
    %182 = arith.divf %180, %181 : vector<16x1xf32>
    %183 = vector.broadcast %175 : vector<16x1xf32> to vector<16x32xf32>
    %184 = arith.subf %169, %183 : vector<16x32xf32>
    %cst_113 = arith.constant 9.99999974E-6 : f32
    %185 = vector.broadcast %cst_113 : f32 to vector<16x1xf32>
    %186 = arith.addf %182, %185 : vector<16x1xf32>
    %187 = math.rsqrt %186 : vector<16x1xf32>
    %188 = vector.broadcast %187 : vector<16x1xf32> to vector<16x32xf32>
    %189 = arith.mulf %184, %188 : vector<16x32xf32>
    %190 = vector.broadcast %170 : vector<1x32xf32> to vector<16x32xf32>
    %191 = arith.mulf %189, %190 : vector<16x32xf32>
    %192 = vector.broadcast %171 : vector<1x32xf32> to vector<16x32xf32>
    %193 = arith.addf %191, %192 : vector<16x32xf32>
    %194 = arith.addf %1, %193 : vector<16x32xf32>
    %195 = vector.shape_cast %194 : vector<16x32xf32> to vector<1x16x32xf32>
    %c0_114 = arith.constant 0 : index
    %c0_115 = arith.constant 0 : index
    %c0_116 = arith.constant 0 : index
    %196 = vector.load %arg14[%c0_114, %c0_115, %c0_116] : memref<1x16x32xf32, #tpu.memory_space<vmem>>, vector<1x16x32xf32>
    tpu.vector_store %arg14[%c0_114, %c0_115, %c0_116], %195 {strides = array<i32>} : memref<1x16x32xf32, #tpu.memory_space<vmem>>, vector<1x16x32xf32>,
    return
  }
  func.func @transform_0(%arg0: i32) -> (i32, i32, i32) {
    %c0_i32 = arith.constant 0 : i32
    %c0_i32_0 = arith.constant 0 : i32
    %c0_i32_1 = arith.constant 0 : i32
    return %arg0, %c0_i32, %c0_i32_0 : i32, i32, i32
  }
  func.func @transform_1(%arg0: i32) -> (i32, i32, i32) {
    %c0_i32 = arith.constant 0 : i32
    %c0_i32_0 = arith.constant 0 : i32
    %c0_i32_1 = arith.constant 0 : i32
    return %arg0, %c0_i32, %c0_i32_0 : i32, i32, i32
  }
  func.func @transform_2(%arg0: i32) -> (i32, i32, i32) {
    %c0_i32 = arith.constant 0 : i32
    %c0_i32_0 = arith.constant 0 : i32
    %c0_i32_1 = arith.constant 0 : i32
    %c0_i32_2 = arith.constant 0 : i32
    return %c0_i32, %c0_i32_0, %c0_i32_1 : i32, i32, i32
  }
  func.func @transform_3(%arg0: i32) -> (i32, i32, i32) {
    %c0_i32 = arith.constant 0 : i32
    %c0_i32_0 = arith.constant 0 : i32
    %c0_i32_1 = arith.constant 0 : i32
    %c0_i32_2 = arith.constant 0 : i32
    return %c0_i32, %c0_i32_0, %c0_i32_1 : i32, i32, i32
  }
  func.func @transform_4(%arg0: i32) -> (i32, i32, i32) {
    %c0_i32 = arith.constant 0 : i32
    %c0_i32_0 = arith.constant 0 : i32
    %c0_i32_1 = arith.constant 0 : i32
    %c0_i32_2 = arith.constant 0 : i32
    return %c0_i32, %c0_i32_0, %c0_i32_1 : i32, i32, i32
  }
  func.func @transform_5(%arg0: i32) -> (i32, i32, i32) {
    %c0_i32 = arith.constant 0 : i32
    %c0_i32_0 = arith.constant 0 : i32
    %c0_i32_1 = arith.constant 0 : i32
    %c0_i32_2 = arith.constant 0 : i32
    return %c0_i32, %c0_i32_0, %c0_i32_1 : i32, i32, i32
  }
  func.func @transform_6(%arg0: i32) -> (i32, i32) {
    %c0_i32 = arith.constant 0 : i32
    %c0_i32_0 = arith.constant 0 : i32
    %c0_i32_1 = arith.constant 0 : i32
    return %c0_i32, %c0_i32_0 : i32, i32
  }
  func.func @transform_7(%arg0: i32) -> (i32, i32) {
    %c0_i32 = arith.constant 0 : i32
    %c0_i32_0 = arith.constant 0 : i32
    %c0_i32_1 = arith.constant 0 : i32
    return %c0_i32, %c0_i32_0 : i32, i32
  }
  func.func @transform_8(%arg0: i32) -> (i32, i32) {
    %c0_i32 = arith.constant 0 : i32
    %c0_i32_0 = arith.constant 0 : i32
    %c0_i32_1 = arith.constant 0 : i32
    return %c0_i32, %c0_i32_0 : i32, i32
  }
  func.func @transform_9(%arg0: i32) -> (i32, i32) {
    %c0_i32 = arith.constant 0 : i32
    %c0_i32_0 = arith.constant 0 : i32
    %c0_i32_1 = arith.constant 0 : i32
    return %c0_i32, %c0_i32_0 : i32, i32
  }
  func.func @transform_10(%arg0: i32) -> (i32, i32) {
    %c0_i32 = arith.constant 0 : i32
    %c0_i32_0 = arith.constant 0 : i32
    %c0_i32_1 = arith.constant 0 : i32
    return %c0_i32, %c0_i32_0 : i32, i32
  }
  func.func @transform_11(%arg0: i32) -> (i32, i32) {
    %c0_i32 = arith.constant 0 : i32
    %c0_i32_0 = arith.constant 0 : i32
    %c0_i32_1 = arith.constant 0 : i32
    return %c0_i32, %c0_i32_0 : i32, i32
  }
  func.func @transform_12(%arg0: i32) -> (i32, i32) {
    %c0_i32 = arith.constant 0 : i32
    %c0_i32_0 = arith.constant 0 : i32
    %c0_i32_1 = arith.constant 0 : i32
    return %c0_i32, %c0_i32_0 : i32, i32
  }
  func.func @transform_13(%arg0: i32) -> (i32, i32, i32) {
    %c0_i32 = arith.constant 0 : i32
    %c0_i32_0 = arith.constant 0 : i32
    %c0_i32_1 = arith.constant 0 : i32
    return %arg0, %c0_i32, %c0_i32_0 : i32, i32, i32
  }
}

</mosaic_0001>

<bundles_post_ra>
// kernel: tpu_custom_call.1
= control target key start
LH: loop header
LB: loop body
LE: loop exit
PB: predicated region body
PF: predicated region fallthrough
CT: control target
= control target key end

     0   :  { %s3346_s0 = inlined_call_operand.vmem [shape: f32[2,16,32], index: 0, kind: input, shape index: {}]   ;;  %s3347_s1 = inlined_call_operand.vmem [shape: f32[2,16,32], index: 1, kind: input, shape index: {}]   ;;  %s3348_s2 = inlined_call_operand.vmem [shape: bf16[4,32,8], index: 2, kind: input, shape index: {}]   ;;  %s3349_s3 = inlined_call_operand.vmem [shape: bf16[4,32,8], index: 3, kind: input, shape index: {}]   ;;  %s3350_s4 = inlined_call_operand.vmem [shape: bf16[4,32,8], index: 4, kind: input, shape index: {}]   ;;  %s3351_s5 = inlined_call_operand.vmem [shape: bf16[4,8,32], index: 5, kind: input, shape index: {}]   ;;  %s3352_s6 = inlined_call_operand.vmem [shape: f32[1,32], index: 6, kind: input, shape index: {}]   ;;  %s3353_s7 = inlined_call_operand.vmem [shape: f32[1,32], index: 7, kind: input, shape index: {}]   ;;  %s3354_s8 = inlined_call_operand.vmem [shape: bf16[32,64], index: 8, kind: input, shape index: {}]   ;;  %s3355_s9 = inlined_call_operand.vmem [shape: bf16[32,64], index: 9, kind: input, shape index: {}]   ;;  %s3356_s10 = inlined_call_operand.vmem [shape: bf16[64,32], index: 10, kind: input, shape index: {}]   ;;  %s3357_s11 = inlined_call_operand.vmem [shape: f32[1,32], index: 11, kind: input, shape index: {}]   ;;  %s3358_s12 = inlined_call_operand.vmem [shape: f32[1,32], index: 12, kind: input, shape index: {}]   ;;  %s3359_s13 = inlined_call_operand.hbm [shape: f32[2,16,32], index: 13, kind: output, shape index: {}]  }
   0x1   :  { %3361 = sst [smem:[#allocation7_spill]] %s3346_s0 }
   0x2   :  { %18 = vsyncpa [#allocation3], 0 }
   0x3   :  { %20 = vsyncpa [#allocation3 + $0x1], 0  ;;  %s2885_s25 = smov 0   ;;  %s2887_s26 = smov 0  }
   0x4   :  { %s2889_s27 = smov 0   ;;  %s2891_s28 = smov 0  }
   0x5 LB: > { %3362 = sst [smem:[#allocation5_spill]] %s2804_s27  ;;  %s2906_s29 = sadd.s32 4294967295, %s2808_s28   ;;  %s2808_s28 = sphi %s2891_s28, %s3371_s28   ;;  %s2804_s27 = sphi %s2889_s27, %s3368_s27   ;;  %s2800_s26 = sphi %s2887_s26, %s3370_s26   ;;  %s2796_s25 = sphi %s2885_s25, %s3369_s25  }
   0x6   : > { %s2227_s30 = sadd.s32 4294967294, %s2808_s28   ;;  %s2910_s14 = sadd.s32 1, %s2808_s28  }
   0x7   : > { %s316_s15 = sadd.s32 1, %s2804_s27  ;;  %s313_s16 = ssub.s32 %s2808_s28, %s2910_s14 }
   0x8   : > { %p326_p0 = scmp.ne.s32.totalorder %s2804_s27, %s2800_s26  ;;  %p314_p1 = scmp.eq.s32.totalorder %s313_s16, 0 }
   0x9   : > { %p327_p2 = scmp.eq.s32.totalorder %s2906_s29, 1  ;;  %p332_p3 = scmp.ne.s32.totalorder %s2800_s26, %s2796_s25 }
   0xa   : > { %p333_p4 = scmp.eq.s32.totalorder %s2227_s30, 1  ;;  %p2230_p7 = scmp.ge.s32.totalorder %s2808_s28, 1 }
   0xb   : > { %s2921_s17 = scalar_select %p314_p1, %s2804_s27, %s316_s15  }
   0xc   : > { %p2923_p5 = por %p327_p2, %p326_p0  ;;  %p2927_p6 = por %p333_p4, %p332_p3 }
   0xd   : > { %3363 = sst [smem:[#allocation6_spill]] %s2921_s17  ;;  %p400_p8 = scmp.lt.s32.totalorder %s2808_s28, 3 }
   0xf   : > { %p401_p9 = pnand %p2230_p7, %p400_p8 }
  0x10   : > { %v2672_v0 = vld [vmem:[%s3348_s2] sm:$0xff] (!%p401_p9)   ;;  %v2810_v1 = vmov (!%p401_p9), 0.0   ;;  %v2674_v3 = vld [vmem:[%s3348_s2 + $0x8] sm:$0xff] (!%p401_p9)   ;;  %vm2811_vm0 = vmmov (!%p401_p9), 0   ;;  %p449_p10 = scmp.lt.s32.totalorder (!%p401_p9), %s2906_s29, 1  ;;  %s3366_s0 = sld [smem:[#allocation7_spill]] (!%p401_p9) }
  0x11   : > { %404 = sbr.rel (%p401_p9) target bundleno = 3406 (0xd4e), region = 72  ;;  %2417 = vmatprep.subr.bf16.mxu1 (!%p401_p9), %v2810_v1  ;;  %2433 = vmatprep.subr.bf16.mxu0 (!%p401_p9), %v2810_v1  ;;  %v2673_v2 = vld [vmem:[%s3348_s2 + $0x20] sm:$0xff] (!%p401_p9)   ;;  %v2675_v4 = vld [vmem:[%s3348_s2 + $0x28] sm:$0xff] (!%p401_p9)   ;;  %v2676_v5 = vld [vmem:[%s3348_s2 + $0x10] sm:$0xff] (!%p401_p9)   ;;  %vm482_vm1 = vcmask (!%p401_p9), 261120   ;;  %vm1177_vm2 = vcmask (!%p401_p9), 64512  }
  0x12   : > { %2418 = vmatpush3.bf16.msra.mxu1 (!%p401_p9), %v2672_v0  ;;  %2421 = vmatprep.mubr.msk.bf16.mxu1 (!%p401_p9), %vm2811_vm0, %v2810_v1  ;;  %v2677_v8 = vld [vmem:[%s3349_s3] sm:$0xff] (!%p401_p9)   ;;  %v2678_v10 = vld [vmem:[%s3348_s2 + $0x18] sm:$0xff] (!%p401_p9)   ;;  %v2679_v11 = vld [vmem:[%s3349_s3 + $0x8] sm:$0xff] (!%p401_p9)   ;;  %vm1225_vm3 = vcmask (!%p401_p9), 130048   ;;  %vm1418_vm4 = vcmask (!%p401_p9), 1043456   ;;  %vm2046_vm5 = vcmask (!%p401_p9), 523264  }
  0x13   : > { %2434 = vmatpush3.bf16.msra.mxu0 (!%p401_p9), %v2673_v2  ;;  %2419 = vmatprep.subr.bf16.mxu1 (!%p401_p9), %v2810_v1  ;;  %v2680_v15 = vld [vmem:[%s3348_s2 + $0x30] sm:$0xff] (!%p401_p9)   ;;  %v2684_v16 = vld [vmem:[%s3349_s3 + $0x20] sm:$0xff] (!%p401_p9)   ;;  %v2681_v17 = vld [vmem:[%s3348_s2 + $0x38] sm:$0xff] (!%p401_p9)   ;;  %s2345_s22 = sshll.u32 (!%p401_p9), %s2906_s29, 8  ;;  %s2812_s16 = smov (!%p401_p9), [#allocation2]  }
  0x14   : > { %2435 = vmatprep.subr.bf16.mxu0 (!%p401_p9), %v2810_v1  ;;  %2437 = vmatprep.mubr.msk.bf16.mxu0 (!%p401_p9), %vm2811_vm0, %v2810_v1  ;;  %v2685_v18 = vld [vmem:[%s3349_s3 + $0x28] sm:$0xff] (!%p401_p9)   ;;  %v2682_v19 = vld [vmem:[%s3349_s3 + $0x10] sm:$0xff] (!%p401_p9)   ;;  %v2686_v20 = vld [vmem:[%s3350_s4] sm:$0xff] (!%p401_p9)  }
  0x15   : > { %v2683_v21 = vld [vmem:[%s3349_s3 + $0x18] sm:$0xff] (!%p401_p9)   ;;  %v2687_v22 = vld [vmem:[%s3350_s4 + $0x8] sm:$0xff] (!%p401_p9)   ;;  %v2688_v23 = vld [vmem:[%s3350_s4 + $0x20] sm:$0xff] (!%p401_p9)  }
  0x16   : > { %2420 = vmatpush3.bf16.msra.mxu1 (!%p401_p9), %v2674_v3  ;;  %v2689_v24 = vld [vmem:[%s3350_s4 + $0x28] sm:$0xff] (!%p401_p9)   ;;  %v2690_v25 = vld [vmem:[%s3349_s3 + $0x30] sm:$0xff] (!%p401_p9)   ;;  %v2691_v26 = vld [vmem:[%s3349_s3 + $0x38] sm:$0xff] (!%p401_p9)  }
  0x17   : > { %2436 = vmatpush3.bf16.msra.mxu0 (!%p401_p9), %v2675_v4  ;;  %2425 = vmatprep.subr.bf16.mxu1 (!%p401_p9), %v2810_v1  ;;  %v2692_v27 = vld [vmem:[%s3350_s4 + $0x10] sm:$0xff] (!%p401_p9)   ;;  %v2693_v28 = vld [vmem:[%s3350_s4 + $0x18] sm:$0xff] (!%p401_p9)  }
  0x18   : > { %s450_s20 = scalar_select %p449_p10, %s2906_s29, 1  ;;  %2449 = vmatprep.subr.bf16.mxu0 %v2810_v1  ;;  %v2694_v29 = vld [vmem:[%s3350_s4 + $0x30] sm:$0xff]   ;;  %v2695_v30 = vld [vmem:[%s3350_s4 + $0x38] sm:$0xff]  }
  0x1a   : > { %s2343_s21 = sshll.u32 %s450_s20, 4  ;;  %s2750_s20 = sshll.u32 %s2812_s16, 4  ;;  %s2751_s20 = int_to_ptr.vmem [resolvable:$false] %s2750_s20 }
  0x1b   : > { %s2958_s24 = scalar_lea.vmem %s3366_s0, %s2343_s21  ;;  %s458_s27 = scalar_lea.vmem %s3347_s1, %s2343_s21 }
  0x1c   : > { %v460_v6 = vld [vmem:[%s2958_s24] sm:$0xff]  ;;  %v461_v7 = vld [vmem:[%s2958_s24 + $0x8] sm:$0xff]  ;;  %s446_s0 = sand.u32 1, %s2800_s26   ;;  %s3298_s21 = scalar_lea.hbm %s3359_s13, %s2345_s22 }
  0x1d   : > { %v2973_v9 = vpack.c.bf16 %v461_v7, %v460_v6  ;;  %v463_v12 = vld [vmem:[%s458_s27] sm:$0xff]  ;;  %v464_v13 = vld [vmem:[%s458_s27 + $0x8] sm:$0xff]  ;;  %s2231_s17 = sshll.u32 %s446_s0, 4  ;;  %s3305_s29 = scalar_lea.sflag [#allocation3], %s446_s0 }
  0x1e   : > { %v2991_v14 = vpack.c.bf16 %v464_v13, %v463_v12  ;;  %s448_s23 = scalar_lea.vmem [#allocation2], %s2231_s17  ;;  %s2752_s22 = scalar_lea.vmem %s2751_s20, 512 }
  0x1f   : > { %2422 = vmatmul.mubr.msk.bf16.vlgmr.msra.gmra.mrb[0].mxu1 %vm482_vm1, %v2973_v9  ;;  %2438 = vmatmul.mubr.msk.bf16.vlgmr.msra.gmra.mrb[0].mxu0 %vm482_vm1, %v2973_v9  ;;  %s2153_s30 = sshll.u32 %s448_s23, 4  ;;  %s3300_s30 = int_to_ptr.vmem [resolvable:$true] %s2153_s30 }
  0x20   : > { %2426 = vmatpush3.bf16.msra.mxu1 %v2676_v5  ;;  %2450 = vmatpush3.bf16.msra.mxu0 %v2677_v8  ;;  %s2746_s17 = scalar_lea.vmem %s3300_s30, 256  ;;  %p2753_p0 = scmp.lt.s32.totalorder %s3300_s30, %s2751_s20 }
  0x21   : > { %2427 = vmatprep.subr.bf16.mxu1 %v2810_v1  ;;  %2451 = vmatprep.subr.bf16.mxu0 %v2810_v1  ;;  %p2747_p11 = scmp.ne.s32.totalorder %s3300_s30, %s2746_s17  ;;  %p2754_p1 = scmp.lt.s32.totalorder %s2752_s22, %s2746_s17 }
  0x22   : > { %2429 = vmatprep.mubr.msk.bf16.mxu1 %vm2811_vm0, %v2810_v1  ;;  %2453 = vmatprep.mubr.msk.bf16.mxu0 %vm2811_vm0, %v2810_v1 }
  0x23   : > { %p2748_p12 = pnand %p2747_p11, %p2923_p5  ;;  %p2755_p2 = por %p2754_p1, %p2753_p0 }
  0x24   : > { %2428 = vmatpush3.bf16.msra.mxu1 %v2678_v10  ;;  %2452 = vmatpush3.bf16.msra.mxu0 %v2679_v11 }
  0x25   : > { %2441 = vmatprep.subr.bf16.mxu1 %v2810_v1  ;;  %2465 = vmatprep.subr.bf16.mxu0 %v2810_v1  ;;  %p2749_p13 = pneg %p2748_p12 }
  0x27   : > { %2430 = vmatmul.mubr.msk.bf16.vlgmr.msra.gmra.mrb[4].mxu1 %vm482_vm1, %v2973_v9  ;;  %2454 = vmatmul.mubr.msk.bf16.vlgmr.msra.gmra.mrb[4].mxu0 %vm482_vm1, %v2991_v14  ;;  %p2756_p3 = pnand %p2755_p2, %p2749_p13 }
  0x28   : > { %2442 = vmatpush3.bf16.msra.mxu1 %v2680_v15  ;;  %2445 = vmatprep.mubr.msk.bf16.mxu1 %vm2811_vm0, %v2810_v1 }
  0x29   : > { %2443 = vmatprep.subr.bf16.mxu1 %v2810_v1  ;;  %2466 = vmatpush3.bf16.msra.mxu0 %v2684_v16 }
  0x2a   : > { %2467 = vmatprep.subr.bf16.mxu0 %v2810_v1  ;;  %2469 = vmatprep.mubr.msk.bf16.mxu0 %vm2811_vm0, %v2810_v1 }
  0x2c   : > { %2444 = vmatpush3.bf16.msra.mxu1 %v2681_v17 }
  0x2d   : > { %2457 = vmatprep.subr.bf16.mxu1 %v2810_v1  ;;  %2468 = vmatpush3.bf16.msra.mxu0 %v2685_v18 }
  0x2e   : > { %2481 = vmatprep.subr.bf16.mxu0 %v2810_v1 }
  0x2f   : > { %2446 = vmatmul.mubr.msk.bf16.vlgmr.msra.gmra.mrb[8].mxu1 %vm482_vm1, %v2973_v9 }
  0x30   : > { %2458 = vmatpush3.bf16.msra.mxu1 %v2682_v19  ;;  %2461 = vmatprep.mubr.msk.bf16.mxu1 %vm2811_vm0, %v2810_v1 }
  0x31   : > { %2459 = vmatprep.subr.bf16.mxu1 %v2810_v1  ;;  %2470 = vmatmul.mubr.msk.bf16.vlgmr.msra.gmra.mrb[8].mxu0 %vm482_vm1, %v2991_v14 }
  0x32   : > { %2482 = vmatpush3.bf16.msra.mxu0 %v2686_v20  ;;  %2485 = vmatprep.mubr.msk.bf16.mxu0 %vm2811_vm0, %v2810_v1 }
  0x33   : > { %2483 = vmatprep.subr.bf16.mxu0 %v2810_v1 }
  0x34   : > { %2460 = vmatpush3.bf16.msra.mxu1 %v2683_v21 }
  0x35   : > { %2473 = vmatprep.subr.bf16.mxu1 %v2810_v1 }
  0x36   : > { %2484 = vmatpush3.bf16.msra.mxu0 %v2687_v22 }
  0x37   : > { %2462 = vmatmul.mubr.msk.bf16.vlgmr.msra.gmra.mrb[12].mxu1 %vm482_vm1, %v2991_v14  ;;  %2497 = vmatprep.subr.bf16.mxu0 %v2810_v1 }
  0x38   : > { %2477 = vmatprep.mubr.msk.bf16.mxu1 %vm2811_vm0, %v2810_v1  ;;  %2474 = vmatpush3.bf16.msra.mxu1 %v2690_v25 }
  0x39   : > { %2486 = vmatmul.mubr.msk.bf16.vlgmr.msra.gmra.mrb[12].mxu0 %vm482_vm1, %v2991_v14  ;;  %2475 = vmatprep.subr.bf16.mxu1 %v2810_v1 }
  0x3a   : > { %2501 = vmatprep.mubr.msk.bf16.mxu0 %vm2811_vm0, %v2810_v1  ;;  %2498 = vmatpush3.bf16.msra.mxu0 %v2688_v23 }
  0x3b   : > { %2499 = vmatprep.subr.bf16.mxu0 %v2810_v1 }
  0x3c   : > { %2476 = vmatpush3.bf16.msra.mxu1 %v2691_v26 }
  0x3d   : > { %2489 = vmatprep.subr.bf16.mxu1 %v2810_v1 }
  0x3e   : > { %2500 = vmatpush3.bf16.msra.mxu0 %v2689_v24 }
  0x3f   : > { %2513 = vmatprep.subr.bf16.mxu0 %v2810_v1  ;;  %2478 = vmatmul.mubr.msk.bf16.vlgmr.msra.gmra.mrb[16].mxu1 %vm482_vm1, %v2991_v14 }
  0x40   : > { %2490 = vmatpush3.bf16.msra.mxu1 %v2692_v27  ;;  %2493 = vmatprep.mubr.msk.bf16.mxu1 %vm2811_vm0, %v2810_v1 }
  0x41   : > { %2502 = vmatmul.mubr.msk.bf16.vlgmr.msra.gmra.mrb[16].mxu0 %vm482_vm1, %v2991_v14  ;;  %2491 = vmatprep.subr.bf16.mxu1 %v2810_v1 }
  0x42   : > { %2515 = vmatprep.mubr.msk.bf16.mxu0 %vm2811_vm0, %v2810_v1 }
  0x44   : > { %2492 = vmatpush3.bf16.msra.mxu1 %v2693_v28 }
  0x45   : > { %2505 = vmatprep.subr.bf16.mxu1 %v2810_v1 }
  0x47   : > { %2494 = vmatmul.mubr.msk.bf16.vlgmr.msra.gmra.mrb[20].mxu1 %vm482_vm1, %v2991_v14 }
  0x48   : > { %2506 = vmatpush3.bf16.msra.mxu1 %v2694_v29  ;;  %2509 = vmatprep.mubr.msk.bf16.mxu1 %vm2811_vm0, %v2810_v1 }
  0x49   : > { %2507 = vmatprep.subr.bf16.mxu1 %v2810_v1 }
  0x4c   : > { %2508 = vmatpush3.bf16.msra.mxu1 %v2695_v30 }
  0x4d   : > { %2519 = vmatprep.subr.bf16.mxu1 %v2810_v1 }
  0x4f   : > { %2510 = vmatmul.mubr.msk.bf16.vlgmr.msra.gmra.mrb[24].mxu1 %vm482_vm1, %v2991_v14 }
  0x50   : > { %2521 = vmatprep.mubr.msk.bf16.mxu1 %vm2811_vm0, %v2810_v1 }
  0xf2   : > { %v520_v31 = vpop.f32.mrb[0].mxu1  ;;  %v640_v32 = vpop.f32.mrb[0].mxu0 }
  0xf3   : > { %v2423_v33 = vpop.f32.mrb[1].mxu1  ;;  %v3099_v34 = vmul.f32 0.35355338, %v640_v32  ;;  %v2439_v35 = vpop.f32.mrb[1].mxu0  ;;  %v527_v36 = vmul.f32 0.35355338, %v520_v31 }
  0xf4   : > { %v523_v37 = vpop.f32.mrb[2].mxu1  ;;  %v643_v38 = vpop.f32.mrb[2].mxu0 }
  0xf5   : > { %v528_v39 = vmul.f32 0.35355338, %v523_v37  ;;  %v2424_v40 = vpop.f32.mrb[3].mxu1  ;;  %v3101_v41 = vmul.f32 0.35355338, %v643_v38  ;;  %v2440_v42 = vpop.f32.mrb[3].mxu0 }
  0xf7   : > { %v1174_v43 = vpack.c.bf16 %v528_v39, %v527_v36  ;;  %v1510_v44 = vpack.c.bf16 %v3101_v41, %v3099_v34 }
  0xfa   : > { %v580_v45 = vpop.f32.mrb[4].mxu1  ;;  %v762_v46 = vpop.f32.mrb[4].mxu0 }
  0xfb   : > { %v2431_v47 = vpop.f32.mrb[5].mxu1  ;;  %v2455_v48 = vpop.f32.mrb[5].mxu0  ;;  %v587_v51 = vmul.f32 0.35355338, %v580_v45 }
  0xfc   : > { %v583_v49 = vpop.f32.mrb[6].mxu1  ;;  %v765_v50 = vpop.f32.mrb[6].mxu0 }
  0xfd   : > { %v588_v52 = vmul.f32 0.35355338, %v583_v49  ;;  %v1175_v53 = vpack.c.bf16 %v765_v50, %v762_v46  ;;  %v2432_v54 = vpop.f32.mrb[7].mxu1  ;;  %v2456_v55 = vpop.f32.mrb[7].mxu0 }
  0xff   : > { %v1295_v56 = vpack.c.bf16 %v588_v52, %v587_v51  ;;  %v1182_v57 = vsel %vm1177_vm2, %v1175_v53, 0 }
 0x100   : > { %2514 = vmatpush3.bf16.xpose.msra.mxu0 %v1182_v57 }
 0x101   : > { %2525 = vmatprep.subr.bf16.mxu0 %v2810_v1 }
 0x102   : > { %v700_v58 = vpop.f32.mrb[8].mxu1 }
 0x103   : > { %v2447_v59 = vpop.f32.mrb[9].mxu1  ;;  %v3109_v62 = vmul.f32 0.35355338, %v700_v58 }
 0x104   : > { %v703_v60 = vpop.f32.mrb[10].mxu1  ;;  %v3107_v61 = vpop.f32.mrb[8].mxu0 }
 0x105   : > { %v3111_v63 = vmul.f32 0.35355338, %v703_v60  ;;  %v2448_v0 = vpop.f32.mrb[11].mxu1  ;;  %v2471_v2 = vpop.f32.mrb[9].mxu0 }
 0x106   : > { %v3113_v3 = vpop.f32.mrb[10].mxu0 }
 0x107   : > { %v1679_v4 = vpack.c.bf16 %v3111_v63, %v3109_v62  ;;  %2516 = vmatmul.mubr.msk.bf16.vlgmr.msra.gmra.mrb[20].mxu0 %vm1177_vm2, %v1174_v43  ;;  %v1511_v5 = vpack.c.bf16 %v3113_v3, %v3107_v61  ;;  %v2472_v6 = vpop.f32.mrb[11].mxu0  ;;  %v2312_v61 = vld [vmem:[%s3351_s5 + $0x4] sm:$0xf] }
 0x108   : > { %2527 = vmatprep.mubr.msk.bf16.mxu0 %vm2811_vm0, %v2810_v1  ;;  %v1420_v3 = vsel %vm1418_vm4, %v2312_v61, 0 }
 0x10a   : > { %v820_v7 = vpop.f32.mrb[12].mxu1 }
 0x10b   : > { %v2463_v8 = vpop.f32.mrb[13].mxu1 }
 0x10c   : > { %v823_v10 = vpop.f32.mrb[14].mxu1  ;;  %v993_v11 = vpop.f32.mrb[12].mxu0 }
 0x10d   : > { %v1296_v12 = vpack.c.bf16 %v823_v10, %v820_v7  ;;  %v2464_v13 = vpop.f32.mrb[15].mxu1  ;;  %v2487_v14 = vpop.f32.mrb[13].mxu0 }
 0x10e   : > { %v996_v15 = vpop.f32.mrb[14].mxu0 }
 0x10f   : > { %v1302_v16 = vsel %vm1177_vm2, %v1296_v12, 0  ;;  %v1176_v17 = vpack.c.bf16 %v996_v15, %v993_v11  ;;  %v2488_v18 = vpop.f32.mrb[15].mxu0 }
 0x110   : > { %2526 = vmatpush3.bf16.xpose.msra.mxu0 %v1302_v16 }
 0x111   : > { %2520 = vmatpush3.bf16.msra.mxu1 %v1176_v17  ;;  %2537 = vmatprep.subr.bf16.mxu0 %v2810_v1 }
 0x112   : > { %2531 = vmatprep.subr.bf16.mxu1 %v2810_v1  ;;  %v3142_v59 = vpop.f32.mrb[16].mxu1 }
 0x113   : > { %v2479_v60 = vpop.f32.mrb[17].mxu1 }
 0x114   : > { %v3128_v19 = vpop.f32.mrb[16].mxu0  ;;  %v3144_v0 = vpop.f32.mrb[18].mxu1 }
 0x115   : > { %v2503_v20 = vpop.f32.mrb[17].mxu0  ;;  %v2480_v2 = vpop.f32.mrb[19].mxu1  ;;  %v1680_v6 = vpack.c.bf16 %v3144_v0, %v3142_v59  ;;  %v2317_v59 = vld [vmem:[%s3351_s5 + $0x8] sm:$0xf] }
 0x116   : > { %v3130_v21 = vpop.f32.mrb[18].mxu0  ;;  %v1634_v0 = vsel %vm1418_vm4, %v2317_v59, 0 }
 0x117   : > { %2528 = vmatmul.mubr.msk.bf16.vlgmr.msra.gmra.mrb[24].mxu0 %vm1177_vm2, %v1295_v56  ;;  %v1512_v22 = vpack.c.bf16 %v3130_v21, %v3128_v19  ;;  %v2504_v23 = vpop.f32.mrb[19].mxu0 }
 0x118   : > { %2539 = vmatprep.mubr.msk.bf16.mxu0 %vm2811_vm0, %v2810_v1  ;;  %2538 = vmatpush3.bf16.msra.mxu0 %v1420_v3 }
 0x119   : > { %2543 = vmatprep.subr.bf16.mxu0 %v2810_v1 }
 0x11a   : > { %v1051_v7 = vpop.f32.mrb[20].mxu1 }
 0x11b   : > { %v2495_v8 = vpop.f32.mrb[21].mxu1 }
 0x11c   : > { %v1054_v10 = vpop.f32.mrb[22].mxu1 }
 0x11d   : > { %v2496_v11 = vpop.f32.mrb[23].mxu1  ;;  %v1297_v12 = vpack.c.bf16 %v1054_v10, %v1051_v7 }
 0x122   : > { %v3148_v13 = vpop.f32.mrb[24].mxu1 }
 0x123   : > { %v2511_v14 = vpop.f32.mrb[25].mxu1 }
 0x124   : > { %v3150_v15 = vpop.f32.mrb[26].mxu1 }
 0x125   : > { %v1681_v16 = vpack.c.bf16 %v3150_v15, %v3148_v13  ;;  %v2512_v17 = vpop.f32.mrb[27].mxu1 }
 0x126   : > { %v1686_v17 = vsel %vm1177_vm2, %v1680_v6, 0 }
 0x1da   : > { %v1218_v24 = vpop.f32.mrb[20].mxu0 }
 0x1db   : > { %v2517_v25 = vpop.f32.mrb[21].mxu0  ;;  %v1226_v26 = vsel %vm1225_vm3, %v1218_v24, -inf }
 0x1dc   : > { %1227 = vmax.xlane.f32.xlu0 %v1226_v26  ;;  %v1221_v27 = vpop.f32.mrb[22].mxu0 }
 0x1dd   : > { %v2518_v28 = vpop.f32.mrb[23].mxu0  ;;  %v1229_v29 = vsel %vm1225_vm3, %v1221_v27, -inf }
 0x1e0   : > { %1230 = vmax.xlane.f32.xlu0 %v1229_v29 }
 0x1ea   : > { %v1338_v30 = vpop.f32.mrb[24].mxu0 }
 0x1eb   : > { %v2529_v31 = vpop.f32.mrb[25].mxu0  ;;  %v1345_v32 = vsel %vm1225_vm3, %v1338_v30, -inf }
 0x1ec   : > { %1346 = vmax.xlane.f32.xlu1 %v1345_v32  ;;  %v1341_v33 = vpop.f32.mrb[26].mxu0 }
 0x1ed   : > { %v2530_v35 = vpop.f32.mrb[27].mxu0  ;;  %v1348_v36 = vsel %vm1225_vm3, %v1341_v33, -inf }
 0x1f0   : > { %1349 = vmax.xlane.f32.xlu1 %v1348_v36  ;;  %v1517_v36 = vsel %vm1177_vm2, %v1511_v5, 0 }
 0x269   : > { %v1228_v37 = vpop.xlane.xlu0 %1227 }
 0x26a   : > { %v1232_v38 = vsub.f32 %v1218_v24, %v1228_v37 }
 0x26c   : > { %v1234_v39 = vmul.f32 1.442695, %v1232_v38 }
 0x26d   : > { %v1231_v40 = vpop.xlane.xlu0 %1230 }
 0x26e   : > { %2704 = vpow2.f32 %v1234_v39  ;;  %v1233_v42 = vsub.f32 %v1221_v27, %v1231_v40 }
 0x270   : > { %v1236_v43 = vmul.f32 1.442695, %v1233_v42 }
 0x272   : > { %2706 = vpow2.f32 %v1236_v43 }
 0x278   : > { %v2705_v45 = vpop.eup %2704 }
 0x279   : > { %v1347_v46 = vpop.xlane.xlu1 %1346  ;;  %v1238_v47 = vsel %vm1225_vm3, %v2705_v45, 0.0 }
 0x27a   : > { %v1351_v48 = vsub.f32 %v1338_v30, %v1347_v46  ;;  %1239 = vadd.xlane.f32.xlu0 %v1238_v47 }
 0x27c   : > { %v2707_v49 = vpop.eup %2706  ;;  %v1353_v50 = vmul.f32 1.442695, %v1351_v48 }
 0x27d   : > { %v1350_v51 = vpop.xlane.xlu1 %1349  ;;  %v1241_v52 = vsel %vm1225_vm3, %v2707_v49, 0.0 }
 0x27e   : > { %2708 = vpow2.f32 %v1353_v50  ;;  %v1352_v53 = vsub.f32 %v1341_v33, %v1350_v51  ;;  %1242 = vadd.xlane.f32.xlu1 %v1241_v52 }
 0x280   : > { %v1355_v54 = vmul.f32 1.442695, %v1352_v53 }
 0x282   : > { %2710 = vpow2.f32 %v1355_v54 }
 0x288   : > { %v2709_v55 = vpop.eup %2708 }
 0x289   : > { %v1357_v56 = vsel %vm1225_vm3, %v2709_v55, 0.0 }
 0x28a   : > { %1358 = vadd.xlane.f32.xlu0 %v1357_v56 }
 0x28c   : > { %v2711_v57 = vpop.eup %2710 }
 0x28d   : > { %v1360_v58 = vsel %vm1225_vm3, %v2711_v57, 0.0 }
 0x28e   : > { %1361 = vadd.xlane.f32.xlu1 %v1360_v58 }
 0x307   : > { %v1240_v18 = vpop.xlane.xlu0 %1239 }
 0x308   : > { %2712 = vrcp.f32 %v1240_v18 }
 0x30b   : > { %v1243_v20 = vpop.xlane.xlu1 %1242 }
 0x30c   : > { %2714 = vrcp.f32 %v1243_v20 }
 0x312   : > { %v2713_v23 = vpop.eup %2712 }
 0x313   : > { %v1246_v25 = vmul.f32 %v2713_v23, %v2705_v45 }
 0x316   : > { %v2715_v24 = vpop.eup %2714 }
 0x317   : > { %v1247_v26 = vmul.f32 %v2715_v24, %v2707_v49  ;;  %v1359_v27 = vpop.xlane.xlu0 %1358 }
 0x318   : > { %2716 = vrcp.f32 %v1359_v27 }
 0x319   : > { %v1248_v28 = vpack.c.bf16 %v1247_v26, %v1246_v25 }
 0x31b   : > { %2522 = vmatmul.mubr.msk.bf16.vlgmr.msra.gmra.mrb[28].mxu1 %vm1225_vm3, %v1248_v28  ;;  %v1362_v29 = vpop.xlane.xlu1 %1361 }
 0x31c   : > { %2718 = vrcp.f32 %v1362_v29  ;;  %2532 = vmatpush3.bf16.msra.mxu1 %v1297_v12  ;;  %2533 = vmatprep.mubr.msk.bf16.mxu1 %vm2811_vm0, %v2810_v1 }
 0x31d   : > { %2549 = vmatprep.subr.bf16.mxu1 %v2810_v1 }
 0x322   : > { %v2717_v30 = vpop.eup %2716 }
 0x323   : > { %v1365_v32 = vmul.f32 %v2717_v30, %v2709_v55 }
 0x326   : > { %v2719_v31 = vpop.eup %2718 }
 0x327   : > { %v1366_v33 = vmul.f32 %v2719_v31, %v2711_v57 }
 0x329   : > { %v1367_v35 = vpack.c.bf16 %v1366_v33, %v1365_v32 }
 0x32b   : > { %2534 = vmatmul.mubr.msk.bf16.vlgmr.msra.gmra.mrb[32].mxu1 %vm1225_vm3, %v1367_v35 }
 0x32c   : > { %2550 = vmatpush3.bf16.xpose.msra.mxu1 %v1517_v36  ;;  %2551 = vmatprep.mubr.msk.bf16.mxu1 %vm2811_vm0, %v2810_v1 }
 0x32d   : > { %2555 = vmatprep.subr.bf16.mxu1 %v2810_v1 }
 0x333   : > { %2552 = vmatmul.mubr.msk.bf16.vlgmr.msra.gmra.mrb[36].mxu1 %vm1177_vm2, %v1510_v44 }
 0x334   : > { %2556 = vmatpush3.bf16.msra.mxu1 %v1512_v22  ;;  %2557 = vmatprep.mubr.msk.bf16.mxu1 %vm2811_vm0, %v2810_v1  ;;  %v1294_v22 = vld [vmem:[%s3351_s5] sm:$0xf] }
 0x335   : > { %2567 = vmatprep.subr.bf16.mxu1 %v2810_v1  ;;  %v1467_v42 = vsel %vm1418_vm4, %v1294_v22, 0 }
 0x3ee   : > { %v1286_v34 = vpop.f32.mrb[28].mxu1 }
 0x3ef   : > { %v2523_v41 = vpop.f32.mrb[29].mxu1 }
 0x3f0   : > { %v1289_v44 = vpop.f32.mrb[30].mxu1  ;;  %v2321_v41 = vld [vmem:[%s3351_s5 + $0xc] sm:$0xf] }
 0x3f1   : > { %v1293_v5 = vpack.c.bf16 %v1289_v44, %v1286_v34  ;;  %v2524_v19 = vpop.f32.mrb[31].mxu1 }
 0x3fe   : > { %v1405_v21 = vpop.f32.mrb[32].mxu1 }
 0x3ff   : > { %v2535_v37 = vpop.f32.mrb[33].mxu1 }
 0x400   : > { %v1408_v38 = vpop.f32.mrb[34].mxu1 }
 0x401   : > { %v1412_v39 = vpack.c.bf16 %v1408_v38, %v1405_v21  ;;  %v2536_v40 = vpop.f32.mrb[35].mxu1  ;;  %v1803_v21 = vsel %vm1418_vm4, %v2321_v41, 0 }
 0x403   : > { %2540 = vmatmul.mubr.msk.bf16.vlgmr.msra.gmra.mrb[28].mxu0 %vm1177_vm2, %v1412_v39 }
 0x404   : > { %2544 = vmatpush3.bf16.msra.mxu0 %v1467_v42  ;;  %2545 = vmatprep.mubr.msk.bf16.mxu0 %vm2811_vm0, %v2810_v1 }
 0x405   : > { %2561 = vmatprep.subr.bf16.mxu0 %v2810_v1 }
 0x406   : > { %v1553_v43 = vpop.f32.mrb[36].mxu1 }
 0x407   : > { %v2553_v45 = vpop.f32.mrb[37].mxu1  ;;  %v1560_v46 = vsel %vm1225_vm3, %v1553_v43, -inf }
 0x408   : > { %1561 = vmax.xlane.f32.xlu0 %v1560_v46  ;;  %v1556_v47 = vpop.f32.mrb[38].mxu1 }
 0x409   : > { %v2554_v48 = vpop.f32.mrb[39].mxu1  ;;  %v1563_v49 = vsel %vm1225_vm3, %v1556_v47, -inf }
 0x40a   : > { %1564 = vmax.xlane.f32.xlu1 %v1563_v49 }
 0x40f   : > { %2546 = vmatmul.mubr.msk.bf16.vlgmr.msra.gmra.mrb[28].mxu0 %vm1177_vm2, %v1293_v5 }
 0x410   : > { %2563 = vmatprep.mubr.msk.bf16.mxu0 %vm2811_vm0, %v2810_v1  ;;  %2562 = vmatpush3.bf16.msra.mxu0 %v1634_v0 }
 0x411   : > { %2573 = vmatprep.subr.bf16.mxu0 %v2810_v1 }
 0x495   : > { %v1562_v50 = vpop.xlane.xlu0 %1561 }
 0x496   : > { %v1566_v51 = vsub.f32 %v1553_v43, %v1562_v50 }
 0x497   : > { %v1565_v52 = vpop.xlane.xlu1 %1564 }
 0x498   : > { %v1568_v53 = vmul.f32 1.442695, %v1566_v51  ;;  %v1567_v54 = vsub.f32 %v1556_v47, %v1565_v52 }
 0x49a   : > { %2720 = vpow2.f32 %v1568_v53  ;;  %v1570_v55 = vmul.f32 1.442695, %v1567_v54 }
 0x49c   : > { %2722 = vpow2.f32 %v1570_v55 }
 0x4a4   : > { %v2721_v56 = vpop.eup %2720 }
 0x4a5   : > { %v1572_v57 = vsel %vm1225_vm3, %v2721_v56, 0.0 }
 0x4a6   : > { %v2723_v58 = vpop.eup %2722  ;;  %1573 = vadd.xlane.f32.xlu0 %v1572_v57 }
 0x4a7   : > { %v1575_v60 = vsel %vm1225_vm3, %v2723_v58, 0.0 }
 0x4a8   : > { %1576 = vadd.xlane.f32.xlu1 %v1575_v60  ;;  %v2696_v60 = vld [vmem:[%s3355_s9] sm:$0xff]  }
 0x533   : > { %v1574_v2 = vpop.xlane.xlu0 %1573 }
 0x534   : > { %2724 = vrcp.f32 %v1574_v2  ;;  %v2697_v2 = vld [vmem:[%s3355_s9 + $0x8] sm:$0xff]  }
 0x535   : > { %v1577_v7 = vpop.xlane.xlu1 %1576 }
 0x536   : > { %2726 = vrcp.f32 %v1577_v7  ;;  %v2700_v7 = vld [vmem:[%s3356_s10] sm:$0xff]  }
 0x53e   : > { %v2725_v8 = vpop.eup %2724 }
 0x53f   : > { %v1580_v11 = vmul.f32 %v2725_v8, %v2721_v56  ;;  %v2701_v8 = vld [vmem:[%s3356_s10 + $0x8] sm:$0xff]  }
 0x540   : > { %v2727_v10 = vpop.eup %2726 }
 0x541   : > { %v1581_v12 = vmul.f32 %v2727_v10, %v2723_v58 }
 0x543   : > { %v1582_v14 = vpack.c.bf16 %v1581_v12, %v1580_v11 }
 0x545   : > { %2558 = vmatmul.mubr.msk.bf16.vlgmr.msra.gmra.mrb[40].mxu1 %vm1225_vm3, %v1582_v14 }
 0x546   : > { %2568 = vmatpush3.bf16.xpose.msra.mxu1 %v1686_v17  ;;  %2569 = vmatprep.mubr.msk.bf16.mxu1 %vm2811_vm0, %v2810_v1 }
 0x547   : > { %2585 = vmatprep.subr.bf16.mxu1 %v2810_v1 }
 0x54d   : > { %2570 = vmatmul.mubr.msk.bf16.vlgmr.msra.gmra.mrb[44].mxu1 %vm1177_vm2, %v1679_v4 }
 0x54e   : > { %2589 = vmatprep.mubr.msk.bf16.mxu1 %vm2811_vm0, %v2810_v1  ;;  %2586 = vmatpush3.bf16.msra.mxu1 %v2696_v60  ;;  %v2744_v60 = vld [vmem:[%s2958_s24] sm:$0xff] }
 0x54f   : > { %2587 = vmatprep.subr.bf16.mxu1 %v2810_v1 }
 0x552   : > { %2588 = vmatpush3.bf16.msra.mxu1 %v2697_v2 }
 0x553   : > { %2593 = vmatprep.subr.bf16.mxu1 %v2810_v1 }
 0x618   : > { %v1620_v6 = vpop.f32.mrb[40].mxu1 }
 0x619   : > { %v2559_v18 = vpop.f32.mrb[41].mxu1 }
 0x61a   : > { %v1623_v20 = vpop.f32.mrb[42].mxu1 }
 0x61b   : > { %v1627_v23 = vpack.c.bf16 %v1623_v20, %v1620_v6  ;;  %v2560_v24 = vpop.f32.mrb[43].mxu1  ;;  %v2323_v6 = vld [vmem:[%s3352_s6] ss:$0 sm:$0xff] }
 0x61d   : > { %2564 = vmatmul.mubr.msk.bf16.vlgmr.msra.gmra.mrb[28].mxu0 %vm1177_vm2, %v1627_v23 }
 0x61e   : > { %2574 = vmatpush3.bf16.msra.mxu0 %v1681_v16  ;;  %2575 = vmatprep.mubr.msk.bf16.mxu0 %vm2811_vm0, %v2810_v1 }
 0x61f   : > { %2579 = vmatprep.subr.bf16.mxu0 %v2810_v1 }
 0x620   : > { %v1722_v62 = vpop.f32.mrb[44].mxu1 }
 0x621   : > { %v2571_v63 = vpop.f32.mrb[45].mxu1  ;;  %v1729_v4 = vsel %vm1225_vm3, %v1722_v62, -inf }
 0x622   : > { %1730 = vmax.xlane.f32.xlu0 %v1729_v4  ;;  %v1725_v25 = vpop.f32.mrb[46].mxu1 }
 0x623   : > { %v2572_v26 = vpop.f32.mrb[47].mxu1  ;;  %v1732_v27 = vsel %vm1225_vm3, %v1725_v25, -inf }
 0x624   : > { %1733 = vmax.xlane.f32.xlu1 %v1732_v27  ;;  %v2698_v26 = vld [vmem:[%s3354_s8] sm:$0xff]  }
 0x6af   : > { %v1731_v28 = vpop.xlane.xlu0 %1730 }
 0x6b0   : > { %v1735_v29 = vsub.f32 %v1722_v62, %v1731_v28  ;;  %v2324_v62 = vld [vmem:[%s3353_s7] ss:$0 sm:$0xff]  ;;  %v2699_v28 = vld [vmem:[%s3354_s8 + $0x8] sm:$0xff]  }
 0x6b1   : > { %v1734_v30 = vpop.xlane.xlu1 %1733 }
 0x6b2   : > { %v1737_v13 = vmul.f32 1.442695, %v1735_v29  ;;  %v1736_v15 = vsub.f32 %v1725_v25, %v1734_v30  ;;  %v2702_v29 = vld [vmem:[%s3356_s10 + $0x10] sm:$0xff]   ;;  %v2703_v30 = vld [vmem:[%s3356_s10 + $0x18] sm:$0xff]  }
 0x6b4   : > { %2728 = vpow2.f32 %v1737_v13  ;;  %v1739_v16 = vmul.f32 1.442695, %v1736_v15 }
 0x6b6   : > { %2730 = vpow2.f32 %v1739_v16 }
 0x6be   : > { %v2729_v31 = vpop.eup %2728 }
 0x6bf   : > { %v1741_v32 = vsel %vm1225_vm3, %v2729_v31, 0.0 }
 0x6c0   : > { %v2731_v33 = vpop.eup %2730  ;;  %1742 = vadd.xlane.f32.xlu0 %v1741_v32 }
 0x6c1   : > { %v1744_v35 = vsel %vm1225_vm3, %v2731_v33, 0.0 }
 0x6c2   : > { %1745 = vadd.xlane.f32.xlu1 %v1744_v35 }
 0x74d   : > { %v1743_v36 = vpop.xlane.xlu0 %1742 }
 0x74e   : > { %2732 = vrcp.f32 %v1743_v36 }
 0x74f   : > { %v1746_v61 = vpop.xlane.xlu1 %1745 }
 0x750   : > { %2734 = vrcp.f32 %v1746_v61 }
 0x758   : > { %v2733_v3 = vpop.eup %2732 }
 0x759   : > { %v1749_v44 = vmul.f32 %v2733_v3, %v2729_v31 }
 0x75a   : > { %v2735_v34 = vpop.eup %2734 }
 0x75b   : > { %v1750_v5 = vmul.f32 %v2735_v34, %v2731_v33 }
 0x75d   : > { %v1751_v19 = vpack.c.bf16 %v1750_v5, %v1749_v44 }
 0x75f   : > { %2576 = vmatmul.mubr.msk.bf16.vlgmr.msra.gmra.mrb[32].mxu0 %vm1225_vm3, %v1751_v19 }
 0x760   : > { %2580 = vmatpush3.bf16.msra.mxu0 %v1803_v21  ;;  %2581 = vmatprep.mubr.msk.bf16.mxu0 %vm2811_vm0, %v2810_v1 }
 0x761   : > { %2601 = vmatprep.subr.bf16.mxu0 %v2810_v1 }
 0x832   : > { %v1789_v22 = vpop.f32.mrb[32].mxu0 }
 0x833   : > { %v2577_v37 = vpop.f32.mrb[33].mxu0 }
 0x834   : > { %v1792_v38 = vpop.f32.mrb[34].mxu0 }
 0x835   : > { %v1796_v39 = vpack.c.bf16 %v1792_v38, %v1789_v22  ;;  %v2578_v40 = vpop.f32.mrb[35].mxu0 }
 0x837   : > { %2582 = vmatmul.mubr.msk.bf16.vlgmr.msra.gmra.mrb[28].mxu0 %vm1177_vm2, %v1796_v39 }
 0x838   : > { %2609 = vmatprep.mubr.msk.bf16.mxu0 %vm2811_vm0, %v2810_v1  ;;  %2602 = vmatpush3.bf16.msra.mxu0 %v2700_v7  ;;  %v2745_v7 = vld [vmem:[%s2958_s24 + $0x8] sm:$0xff] }
 0x839   : > { %2603 = vmatprep.subr.bf16.mxu0 %v2810_v1 }
 0x83c   : > { %2604 = vmatpush3.bf16.msra.mxu0 %v2701_v8 }
 0x83d   : > { %2605 = vmatprep.subr.bf16.mxu0 %v2810_v1 }
 0x840   : > { %2606 = vmatpush3.bf16.msra.mxu0 %v2702_v29 }
 0x841   : > { %2607 = vmatprep.subr.bf16.mxu0 %v2810_v1 }
 0x844   : > { %2608 = vmatpush3.bf16.msra.mxu0 %v2703_v30 }
 0x90a   : > { %v1839_v42 = vpop.f32.mrb[28].mxu0 }
 0x90b   : > { %v2583_v43 = vpop.f32.mrb[29].mxu0  ;;  %v1850_v45 = vsel %vm482_vm1, %v1839_v42, 0.0 }
 0x90c   : > { %1851 = vadd.xlane.f32.xlu0 %v1850_v45  ;;  %v1842_v46 = vpop.f32.mrb[30].mxu0 }
 0x90d   : > { %v2584_v47 = vpop.f32.mrb[31].mxu0  ;;  %v1853_v48 = vsel %vm482_vm1, %v1842_v46, 0.0 }
 0x90e   : > { %1854 = vadd.xlane.f32.xlu1 %v1853_v48 }
 0x999   : > { %v1852_v49 = vpop.xlane.xlu0 %1851 }
 0x99a   : > { %v1857_v50 = vmul.f32 0.03125, %v1852_v49 }
 0x99b   : > { %v1855_v51 = vpop.xlane.xlu1 %1854 }
 0x99c   : > { %v1859_v52 = vsub.f32 %v1839_v42, %v1857_v50  ;;  %v1858_v53 = vmul.f32 0.03125, %v1855_v51  ;;  %v2336_v50 = vld [vmem:[%s3357_s11] ss:$0 sm:$0xff] }
 0x99e   : > { %v1860_v54 = vsub.f32 %v1842_v46, %v1858_v53  ;;  %v1861_v55 = vmul.f32 %v1859_v52, %v1859_v52  ;;  %v2337_v53 = vld [vmem:[%s3358_s12] ss:$0 sm:$0xff] }
 0x9a0   : > { %v1863_v56 = vsel %vm482_vm1, %v1861_v55, 0.0  ;;  %v1862_v57 = vmul.f32 %v1860_v54, %v1860_v54 }
 0x9a1   : > { %1864 = vadd.xlane.f32.xlu0 %v1863_v56 }
 0x9a2   : > { %v1866_v58 = vsel %vm482_vm1, %v1862_v57, 0.0 }
 0x9a3   : > { %1867 = vadd.xlane.f32.xlu1 %v1866_v58 }
 0xa2e   : > { %v1865_v10 = vpop.xlane.xlu0 %1864 }
 0xa2f   : > { %v1869_v11 = vmul.f32 0.03125, %v1865_v10 }
 0xa30   : > { %v1868_v12 = vpop.xlane.xlu1 %1867 }
 0xa31   : > { %v1871_v14 = vadd.f32 1e-05, %v1869_v11  ;;  %v1870_v17 = vmul.f32 0.03125, %v1868_v12 }
 0xa33   : > { %2736 = vrsqrt.f32 %v1871_v14  ;;  %v1872_v59 = vadd.f32 1e-05, %v1870_v17 }
 0xa35   : > { %2738 = vrsqrt.f32 %v1872_v59 }
 0xa3d   : > { %v2737_v0 = vpop.eup %2736 }
 0xa3e   : > { %v1875_v18 = vmul.f32 %v2737_v0, %v1859_v52 }
 0xa3f   : > { %v2739_v20 = vpop.eup %2738 }
 0xa40   : > { %v1883_v23 = vmul.f32 %v2323_v6, %v1875_v18  ;;  %v1876_v24 = vmul.f32 %v2739_v20, %v1860_v54 }
 0xa42   : > { %v1884_v63 = vmul.f32 %v2323_v6, %v1876_v24  ;;  %v1891_v4 = vadd.f32 %v2324_v62, %v1883_v23 }
 0xa44   : > { %v1892_v25 = vadd.f32 %v2324_v62, %v1884_v63 }
 0xa46   : > { %v1897_v27 = vpack.c.bf16 %v1892_v25, %v1891_v4 }
 0xa48   : > { %2590 = vmatmul.mubr.msk.bf16.vlgmr.msra.gmra.mrb[48].mxu1 %vm482_vm1, %v1897_v27 }
 0xa49   : > { %2594 = vmatpush3.bf16.msra.mxu1 %v2698_v26  ;;  %2597 = vmatprep.mubr.msk.bf16.mxu1 %vm2811_vm0, %v2810_v1 }
 0xa4a   : > { %2595 = vmatprep.subr.bf16.mxu1 %v2810_v1 }
 0xa4d   : > { %2596 = vmatpush3.bf16.msra.mxu1 %v2699_v28 }
 0xa54   : > { %2598 = vmatmul.mubr.msk.bf16.vlgmr.msra.gmra.mrb[48].mxu1 %vm482_vm1, %v2973_v9 }
 0xb27   : > { %v2004_v13 = vpop.f32.mrb[48].mxu1 }
 0xb28   : > { %v2599_v15 = vpop.f32.mrb[49].mxu1  ;;  %v2011_v31 = vmax.f32 %v2004_v13, 0.0 }
 0xb29   : > { %v2007_v16 = vpop.f32.mrb[50].mxu1 }
 0xb2a   : > { %v2012_v32 = vmax.f32 %v2007_v16, 0.0  ;;  %v2600_v33 = vpop.f32.mrb[51].mxu1 }
 0xb2c   : > { %v2013_v9 = vpack.c.bf16 %v2012_v32, %v2011_v31 }
 0xb2e   : > { %2610 = vmatmul.mubr.msk.bf16.vlgmr.msra.gmra.mrb[36].mxu0 %vm2046_vm5, %v2013_v9 }
 0xc01   : > { %v2084_v35 = vpop.f32.mrb[36].mxu0 }
 0xc02   : > { %v2611_v36 = vpop.f32.mrb[37].mxu0  ;;  %v2093_v61 = vsel %vm482_vm1, %v2084_v35, 0.0 }
 0xc03   : > { %2094 = vadd.xlane.f32.xlu0 %v2093_v61  ;;  %v2087_v1 = vpop.f32.mrb[38].mxu0 }
 0xc04   : > { %v2612_v3 = vpop.f32.mrb[39].mxu0  ;;  %v2096_v34 = vsel %vm482_vm1, %v2087_v1, 0.0 }
 0xc05   : > { %2097 = vadd.xlane.f32.xlu1 %v2096_v34 }
 0xc90   : > { %v2095_v41 = vpop.xlane.xlu0 %2094 }
 0xc91   : > { %v2099_v44 = vmul.f32 0.03125, %v2095_v41 }
 0xc92   : > { %v2098_v5 = vpop.xlane.xlu1 %2097 }
 0xc93   : > { %v2101_v19 = vsub.f32 %v2084_v35, %v2099_v44  ;;  %v2100_v21 = vmul.f32 0.03125, %v2098_v5 }
 0xc95   : > { %v2102_v22 = vsub.f32 %v2087_v1, %v2100_v21  ;;  %v2103_v37 = vmul.f32 %v2101_v19, %v2101_v19 }
 0xc97   : > { %v2105_v38 = vsel %vm482_vm1, %v2103_v37, 0.0  ;;  %v2104_v39 = vmul.f32 %v2102_v22, %v2102_v22 }
 0xc98   : > { %2106 = vadd.xlane.f32.xlu0 %v2105_v38 }
 0xc99   : > { %v2108_v40 = vsel %vm482_vm1, %v2104_v39, 0.0 }
 0xc9a   : > { %2109 = vadd.xlane.f32.xlu1 %v2108_v40 }
 0xd25   : > { %v2107_v42 = vpop.xlane.xlu0 %2106 }
 0xd26   : > { %v2111_v43 = vmul.f32 0.03125, %v2107_v42 }
 0xd27   : > { %v2110_v45 = vpop.xlane.xlu1 %2109 }
 0xd28   : > { %v2113_v46 = vadd.f32 1e-05, %v2111_v43  ;;  %v2112_v47 = vmul.f32 0.03125, %v2110_v45 }
 0xd2a   : > { %2740 = vrsqrt.f32 %v2113_v46  ;;  %v2114_v48 = vadd.f32 1e-05, %v2112_v47 }
 0xd2c   : > { %2742 = vrsqrt.f32 %v2114_v48 }
 0xd34   : > { %v2741_v49 = vpop.eup %2740 }
 0xd35   : > { %v2117_v51 = vmul.f32 %v2741_v49, %v2101_v19 }
 0xd36   : > { %v2743_v52 = vpop.eup %2742 }
 0xd37   : > { %v2125_v54 = vmul.f32 %v2336_v50, %v2117_v51  ;;  %v2118_v55 = vmul.f32 %v2743_v52, %v2102_v22 }
 0xd39   : > { %v2133_v56 = vadd.f32 %v2337_v53, %v2125_v54  ;;  %v2126_v57 = vmul.f32 %v2336_v50, %v2118_v55 }
 0xd3b   : > { %v2134_v58 = vadd.f32 %v2337_v53, %v2126_v57  ;;  %v2135_v2 = vadd.f32 %v2744_v60, %v2133_v56 }
 0xd3d   : > { %v2136_v8 = vadd.f32 %v2745_v7, %v2134_v58  ;;  %2137 = vst.msk [vmem:[%s448_s23] sm:$0xff] %vm482_vm1, %v2135_v2 }
 0xd3f   : > { %2138 = vst.msk [vmem:[%s448_s23 + $0x8] sm:$0xff] %vm482_vm1, %v2136_v8 }
 0xd40   : > { %2759 = shalt.err (!%p2756_p3)
}
 0xd41   : > { %s2760_s24 = scalar_lea.hbm %s3298_s21, 256  ;;  %s2764_s15 = scalar_lea.hbm %s3359_s13, 512 }
 0xd42   : > { %p2761_p4 = scmp.ne.s32.totalorder %s3298_s21, %s2760_s24  ;;  %p2765_p9 = scmp.lt.u32.totalorder %s3298_s21, %s3359_s13 }
 0xd43   : > { %p2766_p10 = scmp.lt.u32.totalorder %s2764_s15, %s2760_s24  ;;  %p2768_p12 = scmp.lt.u32.totalorder %s2760_s24, %s3298_s21 }
 0xd44   : > { %p2762_p7 = pnand %p2761_p4, %p2923_p5 }
 0xd45   : > { %p2767_p11 = por %p2766_p10, %p2765_p9 }
 0xd46   : > { %p2763_p8 = pneg %p2762_p7 }
 0xd47   : > { %p2769_p13 = por %p2768_p12, %p2767_p11 }
 0xd49   : > { %p2770_p0 = pnand %p2769_p13, %p2763_p8 }
 0xd4b   : > { %2773 = shalt.err (!%p2770_p0)
}
 0xd4c   : > { %s2813_s17 = smov 128   ;;  %s2814_s20 = smov 8  }
 0xd4d   : > { %2629 = dma.vmem_to_hbm [thread:$0]  (%p2923_p5), %s3300_s30, 256, %s3298_s21, %s3305_s29, %s2813_s17, %s2813_s17, %s2814_s20  }
 0xd4e PF: > { %p2635_p1 = scmp.ge.s32.totalorder %s2808_s28, 2  ;;  %s2168_s22 = sand.u32 1, %s2796_s25  }
 0xd4f   : > { %s2169_s24 = scalar_lea.sflag [#allocation3], %s2168_s22 }
 0xd50   : > { %p2632_p2 = pnand %p2635_p1, %p2927_p6 }
 0xd52   : > { %2791 = dma.done.wait (!%p2632_p2), %s2169_s24, 256  }
 0xd53   : > { %2793 = vsyncadd (!%p2632_p2), %s2169_s24, 4294967040  ;;  %s3367_s0 = sld [smem:[#allocation5_spill]]  ;;  %s3368_s27 = sld [smem:[#allocation6_spill]] }
 0xd54   : > { %p23_p3 = scmp.ge.s32.totalorder %s2910_s14, 4   ;;  %s3369_s25 = smov %s2800_s26 }
 0xd55   : > { %s3371_s28 = smov %s2910_s14 }
 0xd56   :  { %25 = sbr.rel (!%p23_p3) target bundleno = 5 (0x5), region = 122 }
 0xd59   : > { %s3370_s26 = smov %s3367_s0 }
 0xd5d   :  { %2174 = vsyncpa [#allocation3], 1 }
 0xd5e   :  { %2176 = vsyncpa [#allocation3 + $0x1], 1 }

</bundles_post_ra>
